<compile_context>
chip_gen: v7x
topology: tpu7x:2x2x1
jax: 0.10.0
libtpu: 0.0.40
codegen_flags: <defaults>
</compile_context>

<pallas_src>
import functools
import math

import jax
import jax.numpy as jnp
from jax import lax
from jax.experimental import pallas as pl
from jax.experimental.pallas import tpu as pltpu

D_MODEL = 32
N_HEADS = 4
D_FF = 64
N_LAYERS = 2
EPS = 1e-6
NEG_INF = 1e9


def _layer_norm(x, a, b):
    # Annotated-Transformer LayerNorm: unbiased std (N-1), eps added to std.
    d = x.shape[-1]
    mean = jnp.mean(x, axis=-1, keepdims=True)
    var = jnp.sum((x - mean) ** 2, axis=-1, keepdims=True) * (1.0 / (d - 1))
    inv = pl.reciprocal(jnp.sqrt(var) + EPS, approx=True)   # EUP slot, not VPU divide
    return (x - mean) * (a * inv) + b


def encoder_kernel(x_ref, mask_ref, wd_ref, w2_ref, vec_ref, out_ref, ctx_ref,
                   *, n_layers, n_heads, batch, seq, d_model, d_ff):
    D = d_model
    H = n_heads
    dk = D // H
    scale = 1.0 / math.sqrt(dk)

    x = x_ref[...]                                    # (B*S, D) slab
    # Additive mask computed once, reused by every layer/head.
    neg_mask = (mask_ref[...] - 1.0) * NEG_INF        # (B, S): 0 keep, -1e9 masked

    # NOTE: static unroll is fine at n_layers=2; switch to lax.fori_loop with
    # dynamic leading-axis weight indexing if the layer count grows.
    for l in range(n_layers):
        vec = vec_ref[l]                              # (8, W) packed vectors
        ln1a, ln1b = vec[0:1, 0:D], vec[1:2, 0:D]
        bqkv = vec[2:3, 0:3 * D]                      # (1, 3D)
        bo = vec[3:4, 0:D]
        ln2a, ln2b = vec[4:5, 0:D], vec[5:6, 0:D]
        b1 = vec[6:7, 0:d_ff]
        b2 = vec[7:8, 0:D]

        wqkv = wd_ref[l, :, 0:3 * D]                  # (D, 3D)
        wo = wd_ref[l, :, 3 * D:4 * D]                # (D, D)
        w1 = wd_ref[l, :, 4 * D:4 * D + d_ff]         # (D, DFF)
        w2 = w2_ref[l]                                # (DFF, D)

        # ---- sublayer 1: x + self_attn(norm(x))  (dropout = identity) ----
        xn = _layer_norm(x, ln1a, ln1b)
        # Single fused Q/K/V projection over the whole slab.
        qkv = jnp.dot(xn, wqkv, preferred_element_type=jnp.float32) + bqkv   # (B*S, 3D)

        # Masked attention: static (batch, head) loops over tiny (S,S) tiles;
        # per-head contexts are packed lane-dense into ctx_ref (B*S, D).
        for b in range(batch):
            qkv_b = qkv[b * seq:(b + 1) * seq]        # (S, 3D)
            nm = neg_mask[b:b + 1, :]                 # (1, S)
            for h in range(H):
                q = qkv_b[:, h * dk:(h + 1) * dk]
                k = qkv_b[:, D + h * dk:D + (h + 1) * dk]
                v = qkv_b[:, 2 * D + h * dk:2 * D + (h + 1) * dk]
                # scores = q @ k^T ("NT" dot_general; transpose trivial at dk=8)
                s = lax.dot_general(q, k, (((1,), (1,)), ((), ())),
                                    preferred_element_type=jnp.float32) * scale
                s = s + nm
                m = jnp.max(s, axis=-1, keepdims=True)
                p = jnp.exp(s - m)
                p = p * pl.reciprocal(jnp.sum(p, axis=-1, keepdims=True),
                                      approx=True)
                ctx_ref[b * seq:(b + 1) * seq, h * dk:(h + 1) * dk] = (
                    jnp.dot(p, v, preferred_element_type=jnp.float32))

        # Single W_O matmul over the whole slab; no per-head sum.
        x = x + jnp.dot(ctx_ref[...], wo, preferred_element_type=jnp.float32) + bo

        # ---- sublayer 2: x + ffn(norm(x)) ----
        xn2 = _layer_norm(x, ln2a, ln2b)
        h1 = jnp.maximum(jnp.dot(xn2, w1, preferred_element_type=jnp.float32) + b1, 0.0)
        x = x + jnp.dot(h1, w2, preferred_element_type=jnp.float32) + b2

    # ---- final LayerNorm (params live in the extra vector-slab slot) ----
    fvec = vec_ref[n_layers]
    out_ref[...] = _layer_norm(x, fvec[0:1, 0:D], fvec[1:2, 0:D])


def _pack_params(layer_params, final_a, final_b):
    """Consolidate all per-layer params into three slabs.

    wd   : (L, D, 3D + D + DFF)  = [Wq|Wk|Wv | Wo | W1] along lanes
    w2   : (L, DFF, D)
    vecs : (L+1, 8, W) one vector per row, zero-padded to W = max(3D, DFF);
           slot L holds the final LayerNorm a/b.
    """
    D = layer_params[0]["wq"].shape[0]
    DFF = layer_params[0]["w1"].shape[1]
    W = max(3 * D, DFF)

    def row(v):
        v = jnp.asarray(v, jnp.float32).reshape(-1)
        return jnp.pad(v, (0, W - v.shape[0]))

    wd, w2, vecs = [], [], []
    for p in layer_params:
        wqkv = jnp.concatenate([p["wq"], p["wk"], p["wv"]], axis=1)        # (D, 3D)
        wd.append(jnp.concatenate([wqkv, p["wo"], p["w1"]], axis=1))       # (D, 4D+DFF)
        w2.append(p["w2"])
        bqkv = jnp.concatenate([p["bq"].reshape(-1), p["bk"].reshape(-1),
                                p["bv"].reshape(-1)])
        vecs.append(jnp.stack([row(p["ln1a"]), row(p["ln1b"]), row(bqkv),
                               row(p["bo"]), row(p["ln2a"]), row(p["ln2b"]),
                               row(p["b1"]), row(p["b2"])]))
    vecs.append(jnp.stack([row(final_a), row(final_b)] +
                          [jnp.zeros((W,), jnp.float32)] * 6))
    return jnp.stack(wd), jnp.stack(w2), jnp.stack(vecs)


def encoder_forward(x, mask, layer_params, final_a, final_b, *, n_heads=N_HEADS):
    # Encoder.forward: for layer in layers: x = layer(x, mask); return norm(x)
    B, S, D = x.shape
    L = len(layer_params)
    DFF = layer_params[0]["w1"].shape[1]
    wd, w2, vecs = _pack_params(layer_params, final_a, final_b)

    kernel = functools.partial(encoder_kernel, n_layers=L, n_heads=n_heads,
                               batch=B, seq=S, d_model=D, d_ff=DFF)
    # Single invocation (no grid): all inputs/outputs live whole in VMEM;
    # the only scratch is the lane-packed per-head context buffer.
    # TODO(synk): if D_MODEL/S/N_LAYERS are scaled up, reintroduce a grid
    # (layer axis "arbitrary", batch axis "parallel") and re-budget VMEM,
    # especially for v7x's 64 MiB.
    out = pl.pallas_call(
        kernel,
        out_shape=jax.ShapeDtypeStruct((B * S, D), jnp.float32),
        scratch_shapes=[pltpu.VMEM((B * S, D), jnp.float32)],
    )(x.reshape(B * S, D), mask.reshape(B, S).astype(jnp.float32), wd, w2, vecs)
    return out.reshape(B, S, D)


def init_params(key, n_layers):
    def linear(k, din, dout):
        kw, kb = jax.random.split(k)
        w = jax.random.normal(kw, (din, dout), jnp.float32) * 0.05
        b = jax.random.normal(kb, (1, dout), jnp.float32) * 0.01
        return w, b

    layer_params = []
    lkeys = jax.random.split(key, n_layers)
    for lk in lkeys:
        ks = jax.random.split(lk, 6)
        wq, bq = linear(ks[0], D_MODEL, D_MODEL)
        wk, bk = linear(ks[1], D_MODEL, D_MODEL)
        wv, bv = linear(ks[2], D_MODEL, D_MODEL)
        wo, bo = linear(ks[3], D_MODEL, D_MODEL)
        w1, b1 = linear(ks[4], D_MODEL, D_FF)
        w2, b2 = linear(ks[5], D_FF, D_MODEL)
        layer_params.append(dict(
            ln1a=jnp.ones((1, D_MODEL), jnp.float32),
            ln1b=jnp.zeros((1, D_MODEL), jnp.float32),
            wq=wq, bq=bq, wk=wk, bk=bk, wv=wv, bv=bv, wo=wo, bo=bo,
            ln2a=jnp.ones((1, D_MODEL), jnp.float32),
            ln2b=jnp.zeros((1, D_MODEL), jnp.float32),
            w1=w1, b1=b1, w2=w2, b2=b2,
        ))
    final_a = jnp.ones((1, D_MODEL), jnp.float32)
    final_b = jnp.zeros((1, D_MODEL), jnp.float32)
    return layer_params, final_a, final_b


if __name__ == "__main__":
    key = jax.random.PRNGKey(0)
    B, S = 2, 8
    kx, kp = jax.random.split(key)
    x = jax.random.normal(kx, (B, S, D_MODEL), jnp.float32)
    # padding mask: first sequence fully valid, second has length 5
    lengths = jnp.array([S, 5])
    mask = (jnp.arange(S)[None, None, :] < lengths[:, None, None]).astype(jnp.float32)

    layer_params, final_a, final_b = init_params(kp, N_LAYERS)
    out = encoder_forward(x, mask, layer_params, final_a, final_b)
    out = jax.block_until_ready(out)

    assert out.shape == (B, S, D_MODEL)
    assert bool(jnp.all(jnp.isfinite(out)))
    print("KERNEL_OK")
</pallas_src>

<mosaic_0001>
module attributes {stable_mosaic.version = 11 : i64} {
  func.func @encoder_kernel(%arg0: memref<16x32xf32, #tpu.memory_space<vmem>>, %arg1: memref<2x8xf32, #tpu.memory_space<vmem>>, %arg2: memref<2x32x192xf32, #tpu.memory_space<vmem>>, %arg3: memref<2x64x32xf32, #tpu.memory_space<vmem>>, %arg4: memref<3x8x96xf32, #tpu.memory_space<vmem>>, %arg5: memref<16x32xf32, #tpu.memory_space<vmem>>, %arg6: memref<16x32xf32, #tpu.memory_space<vmem>>) attributes {dimension_semantics = [], scalar_prefetch = 0 : i64, scratch_operands = 1 : i64, tpu.core_type = #tpu.core_type<tc>} {
    %c0 = arith.constant 0 : index
    %c0_0 = arith.constant 0 : index
    %0 = vector.load %arg0[%c0, %c0_0] : memref<16x32xf32, #tpu.memory_space<vmem>>, vector<16x32xf32>
    %c0_1 = arith.constant 0 : index
    %c0_2 = arith.constant 0 : index
    %1 = vector.load %arg1[%c0_1, %c0_2] : memref<2x8xf32, #tpu.memory_space<vmem>>, vector<2x8xf32>
    %cst = arith.constant 1.000000e+00 : f32
    %2 = vector.broadcast %cst : f32 to vector<2x8xf32>
    %3 = arith.subf %1, %2 : vector<2x8xf32>
    %cst_3 = arith.constant 1.000000e+09 : f32
    %4 = vector.broadcast %cst_3 : f32 to vector<2x8xf32>
    %5 = arith.mulf %3, %4 : vector<2x8xf32>
    %c0_4 = arith.constant 0 : index
    %c0_5 = arith.constant 0 : index
    %c0_6 = arith.constant 0 : index
    %6 = vector.load %arg4[%c0_4, %c0_5, %c0_6] : memref<3x8x96xf32, #tpu.memory_space<vmem>>, vector<1x8x96xf32>
    %7 = vector.shape_cast %6 : vector<1x8x96xf32> to vector<8x96xf32>
    %8 = vector.extract_strided_slice %7 {offsets = [0, 0], sizes = [1, 32], strides = [1, 1]} : vector<8x96xf32> to vector<1x32xf32>
    %9 = vector.extract_strided_slice %7 {offsets = [1, 0], sizes = [1, 32], strides = [1, 1]} : vector<8x96xf32> to vector<1x32xf32>
    %10 = vector.extract_strided_slice %7 {offsets = [2, 0], sizes = [1, 96], strides = [1, 1]} : vector<8x96xf32> to vector<1x96xf32>
    %11 = vector.extract_strided_slice %7 {offsets = [3, 0], sizes = [1, 32], strides = [1, 1]} : vector<8x96xf32> to vector<1x32xf32>
    %12 = vector.extract_strided_slice %7 {offsets = [4, 0], sizes = [1, 32], strides = [1, 1]} : vector<8x96xf32> to vector<1x32xf32>
    %13 = vector.extract_strided_slice %7 {offsets = [5, 0], sizes = [1, 32], strides = [1, 1]} : vector<8x96xf32> to vector<1x32xf32>
    %14 = vector.extract_strided_slice %7 {offsets = [6, 0], sizes = [1, 64], strides = [1, 1]} : vector<8x96xf32> to vector<1x64xf32>
    %15 = vector.extract_strided_slice %7 {offsets = [7, 0], sizes = [1, 32], strides = [1, 1]} : vector<8x96xf32> to vector<1x32xf32>
    %c0_7 = arith.constant 0 : index
    %c0_8 = arith.constant 0 : index
    %c0_9 = arith.constant 0 : index
    %16 = vector.load %arg2[%c0_7, %c0_8, %c0_9] : memref<2x32x192xf32, #tpu.memory_space<vmem>>, vector<1x32x96xf32>
    %17 = vector.shape_cast %16 : vector<1x32x96xf32> to vector<32x96xf32>
    %c0_10 = arith.constant 0 : index
    %c0_11 = arith.constant 0 : index
    %c96 = arith.constant 96 : index
    %18 = vector.load %arg2[%c0_10, %c0_11, %c96] : memref<2x32x192xf32, #tpu.memory_space<vmem>>, vector<1x32x32xf32>
    %19 = vector.shape_cast %18 : vector<1x32x32xf32> to vector<32x32xf32>
    %c0_12 = arith.constant 0 : index
    %c0_13 = arith.constant 0 : index
    %c128 = arith.constant 128 : index
    %20 = vector.load %arg2[%c0_12, %c0_13, %c128] : memref<2x32x192xf32, #tpu.memory_space<vmem>>, vector<1x32x64xf32>
    %21 = vector.shape_cast %20 : vector<1x32x64xf32> to vector<32x64xf32>
    %c0_14 = arith.constant 0 : index
    %c0_15 = arith.constant 0 : index
    %c0_16 = arith.constant 0 : index
    %22 = vector.load %arg3[%c0_14, %c0_15, %c0_16] : memref<2x64x32xf32, #tpu.memory_space<vmem>>, vector<1x64x32xf32>
    %23 = vector.shape_cast %22 : vector<1x64x32xf32> to vector<64x32xf32>
    %cst_17 = arith.constant dense<0.000000e+00> : vector<16xf32>
    %24 = vector.multi_reduction <add>, %0, %cst_17 [1] : vector<16x32xf32> to vector<16xf32>
    %25 = vector.shape_cast %24 : vector<16xf32> to vector<16x1xf32>
    %cst_18 = arith.constant 3.200000e+01 : f32
    %26 = vector.broadcast %cst_18 : f32 to vector<16x1xf32>
    %27 = arith.divf %25, %26 : vector<16x1xf32>
    %28 = vector.broadcast %27 : vector<16x1xf32> to vector<16x32xf32>
    %29 = arith.subf %0, %28 : vector<16x32xf32>
    %30 = arith.mulf %29, %29 : vector<16x32xf32>
    %cst_19 = arith.constant dense<0.000000e+00> : vector<16xf32>
    %31 = vector.multi_reduction <add>, %30, %cst_19 [1] : vector<16x32xf32> to vector<16xf32>
    %32 = vector.shape_cast %31 : vector<16xf32> to vector<16x1xf32>
    %cst_20 = arith.constant 0.0322580636 : f32
    %33 = vector.broadcast %cst_20 : f32 to vector<16x1xf32>
    %34 = arith.mulf %32, %33 : vector<16x1xf32>
    %35 = math.sqrt %34 : vector<16x1xf32>
    %cst_21 = arith.constant 9.99999997E-7 : f32
    %36 = vector.broadcast %cst_21 : f32 to vector<16x1xf32>
    %37 = arith.addf %35, %36 : vector<16x1xf32>
    %38 = tpu.reciprocal %37 {approx = true} : vector<16x1xf32> -> vector<16x1xf32>
    %39 = vector.broadcast %27 : vector<16x1xf32> to vector<16x32xf32>
    %40 = arith.subf %0, %39 : vector<16x32xf32>
    %41 = vector.broadcast %8 : vector<1x32xf32> to vector<16x32xf32>
    %42 = vector.broadcast %38 : vector<16x1xf32> to vector<16x32xf32>
    %43 = arith.mulf %41, %42 : vector<16x32xf32>
    %44 = arith.mulf %40, %43 : vector<16x32xf32>
    %45 = vector.broadcast %9 : vector<1x32xf32> to vector<16x32xf32>
    %46 = arith.addf %44, %45 : vector<16x32xf32>
    %cst_22 = arith.constant dense<0.000000e+00> : vector<16x96xf32>
    %47 = tpu.matmul %46, %17, %cst_22 {dimension_numbers = #tpu.dot_dimension_numbers<[1], [0], [0], [1], [0, 0, 1, 1], [], []>} : vector<16x32xf32>, vector<32x96xf32>, vector<16x96xf32> -> vector<16x96xf32>
    %48 = vector.broadcast %10 : vector<1x96xf32> to vector<16x96xf32>
    %49 = arith.addf %47, %48 : vector<16x96xf32>
    %50 = vector.extract_strided_slice %49 {offsets = [0, 0], sizes = [8, 96], strides = [1, 1]} : vector<16x96xf32> to vector<8x96xf32>
    %51 = vector.extract_strided_slice %5 {offsets = [0, 0], sizes = [1, 8], strides = [1, 1]} : vector<2x8xf32> to vector<1x8xf32>
    %52 = vector.extract_strided_slice %50 {offsets = [0, 0], sizes = [8, 8], strides = [1, 1]} : vector<8x96xf32> to vector<8x8xf32>
    %53 = vector.extract_strided_slice %50 {offsets = [0, 32], sizes = [8, 8], strides = [1, 1]} : vector<8x96xf32> to vector<8x8xf32>
    %54 = vector.extract_strided_slice %50 {offsets = [0, 64], sizes = [8, 8], strides = [1, 1]} : vector<8x96xf32> to vector<8x8xf32>
    %cst_23 = arith.constant dense<0.000000e+00> : vector<8x8xf32>
    %55 = tpu.matmul %52, %53, %cst_23 {dimension_numbers = #tpu.dot_dimension_numbers<[1], [1], [0], [0], [0, 0, 1, 0], [], []>} : vector<8x8xf32>, vector<8x8xf32>, vector<8x8xf32> -> vector<8x8xf32>
    %cst_24 = arith.constant 0.353553385 : f32
    %56 = vector.broadcast %cst_24 : f32 to vector<8x8xf32>
    %57 = arith.mulf %55, %56 : vector<8x8xf32>
    %58 = vector.broadcast %51 : vector<1x8xf32> to vector<8x8xf32>
    %59 = arith.addf %57, %58 : vector<8x8xf32>
    %cst_25 = arith.constant dense<0xFF800000> : vector<8xf32>
    %60 = vector.multi_reduction <maximumf>, %59, %cst_25 [1] : vector<8x8xf32> to vector<8xf32>
    %61 = vector.shape_cast %60 : vector<8xf32> to vector<8x1xf32>
    %62 = vector.broadcast %61 : vector<8x1xf32> to vector<8x8xf32>
    %63 = arith.subf %59, %62 : vector<8x8xf32>
    %64 = math.exp %63 : vector<8x8xf32>
    %cst_26 = arith.constant dense<0.000000e+00> : vector<8xf32>
    %65 = vector.multi_reduction <add>, %64, %cst_26 [1] : vector<8x8xf32> to vector<8xf32>
    %66 = vector.shape_cast %65 : vector<8xf32> to vector<8x1xf32>
    %67 = tpu.reciprocal %66 {approx = true} : vector<8x1xf32> -> vector<8x1xf32>
    %68 = vector.broadcast %67 : vector<8x1xf32> to vector<8x8xf32>
    %69 = arith.mulf %64, %68 : vector<8x8xf32>
    %cst_27 = arith.constant dense<0.000000e+00> : vector<8x8xf32>
    %70 = tpu.matmul %69, %54, %cst_27 {dimension_numbers = #tpu.dot_dimension_numbers<[1], [0], [0], [1], [0, 0, 1, 1], [], []>} : vector<8x8xf32>, vector<8x8xf32>, vector<8x8xf32> -> vector<8x8xf32>
    %c0_28 = arith.constant 0 : index
    %c0_29 = arith.constant 0 : index
    %71 = vector.load %arg6[%c0_28, %c0_29] : memref<16x32xf32, #tpu.memory_space<vmem>>, vector<8x8xf32>
    tpu.vector_store %arg6[%c0_28, %c0_29], %70 {strides = array<i32>} : memref<16x32xf32, #tpu.memory_space<vmem>>, vector<8x8xf32>,
    %72 = vector.extract_strided_slice %50 {offsets = [0, 8], sizes = [8, 8], strides = [1, 1]} : vector<8x96xf32> to vector<8x8xf32>
    %73 = vector.extract_strided_slice %50 {offsets = [0, 40], sizes = [8, 8], strides = [1, 1]} : vector<8x96xf32> to vector<8x8xf32>
    %74 = vector.extract_strided_slice %50 {offsets = [0, 72], sizes = [8, 8], strides = [1, 1]} : vector<8x96xf32> to vector<8x8xf32>
    %cst_30 = arith.constant dense<0.000000e+00> : vector<8x8xf32>
    %75 = tpu.matmul %72, %73, %cst_30 {dimension_numbers = #tpu.dot_dimension_numbers<[1], [1], [0], [0], [0, 0, 1, 0], [], []>} : vector<8x8xf32>, vector<8x8xf32>, vector<8x8xf32> -> vector<8x8xf32>
    %cst_31 = arith.constant 0.353553385 : f32
    %76 = vector.broadcast %cst_31 : f32 to vector<8x8xf32>
    %77 = arith.mulf %75, %76 : vector<8x8xf32>
    %78 = vector.broadcast %51 : vector<1x8xf32> to vector<8x8xf32>
    %79 = arith.addf %77, %78 : vector<8x8xf32>
    %cst_32 = arith.constant dense<0xFF800000> : vector<8xf32>
    %80 = vector.multi_reduction <maximumf>, %79, %cst_32 [1] : vector<8x8xf32> to vector<8xf32>
    %81 = vector.shape_cast %80 : vector<8xf32> to vector<8x1xf32>
    %82 = vector.broadcast %81 : vector<8x1xf32> to vector<8x8xf32>
    %83 = arith.subf %79, %82 : vector<8x8xf32>
    %84 = math.exp %83 : vector<8x8xf32>
    %cst_33 = arith.constant dense<0.000000e+00> : vector<8xf32>
    %85 = vector.multi_reduction <add>, %84, %cst_33 [1] : vector<8x8xf32> to vector<8xf32>
    %86 = vector.shape_cast %85 : vector<8xf32> to vector<8x1xf32>
    %87 = tpu.reciprocal %86 {approx = true} : vector<8x1xf32> -> vector<8x1xf32>
    %88 = vector.broadcast %87 : vector<8x1xf32> to vector<8x8xf32>
    %89 = arith.mulf %84, %88 : vector<8x8xf32>
    %cst_34 = arith.constant dense<0.000000e+00> : vector<8x8xf32>
    %90 = tpu.matmul %89, %74, %cst_34 {dimension_numbers = #tpu.dot_dimension_numbers<[1], [0], [0], [1], [0, 0, 1, 1], [], []>} : vector<8x8xf32>, vector<8x8xf32>, vector<8x8xf32> -> vector<8x8xf32>
    %c0_35 = arith.constant 0 : index
    %c8 = arith.constant 8 : index
    %91 = vector.load %arg6[%c0_35, %c8] : memref<16x32xf32, #tpu.memory_space<vmem>>, vector<8x8xf32>
    tpu.vector_store %arg6[%c0_35, %c8], %90 {strides = array<i32>} : memref<16x32xf32, #tpu.memory_space<vmem>>, vector<8x8xf32>,
    %92 = vector.extract_strided_slice %50 {offsets = [0, 16], sizes = [8, 8], strides = [1, 1]} : vector<8x96xf32> to vector<8x8xf32>
    %93 = vector.extract_strided_slice %50 {offsets = [0, 48], sizes = [8, 8], strides = [1, 1]} : vector<8x96xf32> to vector<8x8xf32>
    %94 = vector.extract_strided_slice %50 {offsets = [0, 80], sizes = [8, 8], strides = [1, 1]} : vector<8x96xf32> to vector<8x8xf32>
    %cst_36 = arith.constant dense<0.000000e+00> : vector<8x8xf32>
    %95 = tpu.matmul %92, %93, %cst_36 {dimension_numbers = #tpu.dot_dimension_numbers<[1], [1], [0], [0], [0, 0, 1, 0], [], []>} : vector<8x8xf32>, vector<8x8xf32>, vector<8x8xf32> -> vector<8x8xf32>
    %cst_37 = arith.constant 0.353553385 : f32
    %96 = vector.broadcast %cst_37 : f32 to vector<8x8xf32>
    %97 = arith.mulf %95, %96 : vector<8x8xf32>
    %98 = vector.broadcast %51 : vector<1x8xf32> to vector<8x8xf32>
    %99 = arith.addf %97, %98 : vector<8x8xf32>
    %cst_38 = arith.constant dense<0xFF800000> : vector<8xf32>
    %100 = vector.multi_reduction <maximumf>, %99, %cst_38 [1] : vector<8x8xf32> to vector<8xf32>
    %101 = vector.shape_cast %100 : vector<8xf32> to vector<8x1xf32>
    %102 = vector.broadcast %101 : vector<8x1xf32> to vector<8x8xf32>
    %103 = arith.subf %99, %102 : vector<8x8xf32>
    %104 = math.exp %103 : vector<8x8xf32>
    %cst_39 = arith.constant dense<0.000000e+00> : vector<8xf32>
    %105 = vector.multi_reduction <add>, %104, %cst_39 [1] : vector<8x8xf32> to vector<8xf32>
    %106 = vector.shape_cast %105 : vector<8xf32> to vector<8x1xf32>
    %107 = tpu.reciprocal %106 {approx = true} : vector<8x1xf32> -> vector<8x1xf32>
    %108 = vector.broadcast %107 : vector<8x1xf32> to vector<8x8xf32>
    %109 = arith.mulf %104, %108 : vector<8x8xf32>
    %cst_40 = arith.constant dense<0.000000e+00> : vector<8x8xf32>
    %110 = tpu.matmul %109, %94, %cst_40 {dimension_numbers = #tpu.dot_dimension_numbers<[1], [0], [0], [1], [0, 0, 1, 1], [], []>} : vector<8x8xf32>, vector<8x8xf32>, vector<8x8xf32> -> vector<8x8xf32>
    %c0_41 = arith.constant 0 : index
    %c16 = arith.constant 16 : index
    %111 = vector.load %arg6[%c0_41, %c16] : memref<16x32xf32, #tpu.memory_space<vmem>>, vector<8x8xf32>
    tpu.vector_store %arg6[%c0_41, %c16], %110 {strides = array<i32>} : memref<16x32xf32, #tpu.memory_space<vmem>>, vector<8x8xf32>,
    %112 = vector.extract_strided_slice %50 {offsets = [0, 24], sizes = [8, 8], strides = [1, 1]} : vector<8x96xf32> to vector<8x8xf32>
    %113 = vector.extract_strided_slice %50 {offsets = [0, 56], sizes = [8, 8], strides = [1, 1]} : vector<8x96xf32> to vector<8x8xf32>
    %114 = vector.extract_strided_slice %50 {offsets = [0, 88], sizes = [8, 8], strides = [1, 1]} : vector<8x96xf32> to vector<8x8xf32>
    %cst_42 = arith.constant dense<0.000000e+00> : vector<8x8xf32>
    %115 = tpu.matmul %112, %113, %cst_42 {dimension_numbers = #tpu.dot_dimension_numbers<[1], [1], [0], [0], [0, 0, 1, 0], [], []>} : vector<8x8xf32>, vector<8x8xf32>, vector<8x8xf32> -> vector<8x8xf32>
    %cst_43 = arith.constant 0.353553385 : f32
    %116 = vector.broadcast %cst_43 : f32 to vector<8x8xf32>
    %117 = arith.mulf %115, %116 : vector<8x8xf32>
    %118 = vector.broadcast %51 : vector<1x8xf32> to vector<8x8xf32>
    %119 = arith.addf %117, %118 : vector<8x8xf32>
    %cst_44 = arith.constant dense<0xFF800000> : vector<8xf32>
    %120 = vector.multi_reduction <maximumf>, %119, %cst_44 [1] : vector<8x8xf32> to vector<8xf32>
    %121 = vector.shape_cast %120 : vector<8xf32> to vector<8x1xf32>
    %122 = vector.broadcast %121 : vector<8x1xf32> to vector<8x8xf32>
    %123 = arith.subf %119, %122 : vector<8x8xf32>
    %124 = math.exp %123 : vector<8x8xf32>
    %cst_45 = arith.constant dense<0.000000e+00> : vector<8xf32>
    %125 = vector.multi_reduction <add>, %124, %cst_45 [1] : vector<8x8xf32> to vector<8xf32>
    %126 = vector.shape_cast %125 : vector<8xf32> to vector<8x1xf32>
    %127 = tpu.reciprocal %126 {approx = true} : vector<8x1xf32> -> vector<8x1xf32>
    %128 = vector.broadcast %127 : vector<8x1xf32> to vector<8x8xf32>
    %129 = arith.mulf %124, %128 : vector<8x8xf32>
    %cst_46 = arith.constant dense<0.000000e+00> : vector<8x8xf32>
    %130 = tpu.matmul %129, %114, %cst_46 {dimension_numbers = #tpu.dot_dimension_numbers<[1], [0], [0], [1], [0, 0, 1, 1], [], []>} : vector<8x8xf32>, vector<8x8xf32>, vector<8x8xf32> -> vector<8x8xf32>
    %c0_47 = arith.constant 0 : index
    %c24 = arith.constant 24 : index
    %131 = vector.load %arg6[%c0_47, %c24] : memref<16x32xf32, #tpu.memory_space<vmem>>, vector<8x8xf32>
    tpu.vector_store %arg6[%c0_47, %c24], %130 {strides = array<i32>} : memref<16x32xf32, #tpu.memory_space<vmem>>, vector<8x8xf32>,
    %132 = vector.extract_strided_slice %49 {offsets = [8, 0], sizes = [8, 96], strides = [1, 1]} : vector<16x96xf32> to vector<8x96xf32>
    %133 = vector.extract_strided_slice %5 {offsets = [1, 0], sizes = [1, 8], strides = [1, 1]} : vector<2x8xf32> to vector<1x8xf32>
    %134 = vector.extract_strided_slice %132 {offsets = [0, 0], sizes = [8, 8], strides = [1, 1]} : vector<8x96xf32> to vector<8x8xf32>
    %135 = vector.extract_strided_slice %132 {offsets = [0, 32], sizes = [8, 8], strides = [1, 1]} : vector<8x96xf32> to vector<8x8xf32>
    %136 = vector.extract_strided_slice %132 {offsets = [0, 64], sizes = [8, 8], strides = [1, 1]} : vector<8x96xf32> to vector<8x8xf32>
    %cst_48 = arith.constant dense<0.000000e+00> : vector<8x8xf32>
    %137 = tpu.matmul %134, %135, %cst_48 {dimension_numbers = #tpu.dot_dimension_numbers<[1], [1], [0], [0], [0, 0, 1, 0], [], []>} : vector<8x8xf32>, vector<8x8xf32>, vector<8x8xf32> -> vector<8x8xf32>
    %cst_49 = arith.constant 0.353553385 : f32
    %138 = vector.broadcast %cst_49 : f32 to vector<8x8xf32>
    %139 = arith.mulf %137, %138 : vector<8x8xf32>
    %140 = vector.broadcast %133 : vector<1x8xf32> to vector<8x8xf32>
    %141 = arith.addf %139, %140 : vector<8x8xf32>
    %cst_50 = arith.constant dense<0xFF800000> : vector<8xf32>
    %142 = vector.multi_reduction <maximumf>, %141, %cst_50 [1] : vector<8x8xf32> to vector<8xf32>
    %143 = vector.shape_cast %142 : vector<8xf32> to vector<8x1xf32>
    %144 = vector.broadcast %143 : vector<8x1xf32> to vector<8x8xf32>
    %145 = arith.subf %141, %144 : vector<8x8xf32>
    %146 = math.exp %145 : vector<8x8xf32>
    %cst_51 = arith.constant dense<0.000000e+00> : vector<8xf32>
    %147 = vector.multi_reduction <add>, %146, %cst_51 [1] : vector<8x8xf32> to vector<8xf32>
    %148 = vector.shape_cast %147 : vector<8xf32> to vector<8x1xf32>
    %149 = tpu.reciprocal %148 {approx = true} : vector<8x1xf32> -> vector<8x1xf32>
    %150 = vector.broadcast %149 : vector<8x1xf32> to vector<8x8xf32>
    %151 = arith.mulf %146, %150 : vector<8x8xf32>
    %cst_52 = arith.constant dense<0.000000e+00> : vector<8x8xf32>
    %152 = tpu.matmul %151, %136, %cst_52 {dimension_numbers = #tpu.dot_dimension_numbers<[1], [0], [0], [1], [0, 0, 1, 1], [], []>} : vector<8x8xf32>, vector<8x8xf32>, vector<8x8xf32> -> vector<8x8xf32>
    %c8_53 = arith.constant 8 : index
    %c0_54 = arith.constant 0 : index
    %153 = vector.load %arg6[%c8_53, %c0_54] : memref<16x32xf32, #tpu.memory_space<vmem>>, vector<8x8xf32>
    tpu.vector_store %arg6[%c8_53, %c0_54], %152 {strides = array<i32>} : memref<16x32xf32, #tpu.memory_space<vmem>>, vector<8x8xf32>,
    %154 = vector.extract_strided_slice %132 {offsets = [0, 8], sizes = [8, 8], strides = [1, 1]} : vector<8x96xf32> to vector<8x8xf32>
    %155 = vector.extract_strided_slice %132 {offsets = [0, 40], sizes = [8, 8], strides = [1, 1]} : vector<8x96xf32> to vector<8x8xf32>
    %156 = vector.extract_strided_slice %132 {offsets = [0, 72], sizes = [8, 8], strides = [1, 1]} : vector<8x96xf32> to vector<8x8xf32>
    %cst_55 = arith.constant dense<0.000000e+00> : vector<8x8xf32>
    %157 = tpu.matmul %154, %155, %cst_55 {dimension_numbers = #tpu.dot_dimension_numbers<[1], [1], [0], [0], [0, 0, 1, 0], [], []>} : vector<8x8xf32>, vector<8x8xf32>, vector<8x8xf32> -> vector<8x8xf32>
    %cst_56 = arith.constant 0.353553385 : f32
    %158 = vector.broadcast %cst_56 : f32 to vector<8x8xf32>
    %159 = arith.mulf %157, %158 : vector<8x8xf32>
    %160 = vector.broadcast %133 : vector<1x8xf32> to vector<8x8xf32>
    %161 = arith.addf %159, %160 : vector<8x8xf32>
    %cst_57 = arith.constant dense<0xFF800000> : vector<8xf32>
    %162 = vector.multi_reduction <maximumf>, %161, %cst_57 [1] : vector<8x8xf32> to vector<8xf32>
    %163 = vector.shape_cast %162 : vector<8xf32> to vector<8x1xf32>
    %164 = vector.broadcast %163 : vector<8x1xf32> to vector<8x8xf32>
    %165 = arith.subf %161, %164 : vector<8x8xf32>
    %166 = math.exp %165 : vector<8x8xf32>
    %cst_58 = arith.constant dense<0.000000e+00> : vector<8xf32>
    %167 = vector.multi_reduction <add>, %166, %cst_58 [1] : vector<8x8xf32> to vector<8xf32>
    %168 = vector.shape_cast %167 : vector<8xf32> to vector<8x1xf32>
    %169 = tpu.reciprocal %168 {approx = true} : vector<8x1xf32> -> vector<8x1xf32>
    %170 = vector.broadcast %169 : vector<8x1xf32> to vector<8x8xf32>
    %171 = arith.mulf %166, %170 : vector<8x8xf32>
    %cst_59 = arith.constant dense<0.000000e+00> : vector<8x8xf32>
    %172 = tpu.matmul %171, %156, %cst_59 {dimension_numbers = #tpu.dot_dimension_numbers<[1], [0], [0], [1], [0, 0, 1, 1], [], []>} : vector<8x8xf32>, vector<8x8xf32>, vector<8x8xf32> -> vector<8x8xf32>
    %c8_60 = arith.constant 8 : index
    %c8_61 = arith.constant 8 : index
    %173 = vector.load %arg6[%c8_60, %c8_61] : memref<16x32xf32, #tpu.memory_space<vmem>>, vector<8x8xf32>
    tpu.vector_store %arg6[%c8_60, %c8_61], %172 {strides = array<i32>} : memref<16x32xf32, #tpu.memory_space<vmem>>, vector<8x8xf32>,
    %174 = vector.extract_strided_slice %132 {offsets = [0, 16], sizes = [8, 8], strides = [1, 1]} : vector<8x96xf32> to vector<8x8xf32>
    %175 = vector.extract_strided_slice %132 {offsets = [0, 48], sizes = [8, 8], strides = [1, 1]} : vector<8x96xf32> to vector<8x8xf32>
    %176 = vector.extract_strided_slice %132 {offsets = [0, 80], sizes = [8, 8], strides = [1, 1]} : vector<8x96xf32> to vector<8x8xf32>
    %cst_62 = arith.constant dense<0.000000e+00> : vector<8x8xf32>
    %177 = tpu.matmul %174, %175, %cst_62 {dimension_numbers = #tpu.dot_dimension_numbers<[1], [1], [0], [0], [0, 0, 1, 0], [], []>} : vector<8x8xf32>, vector<8x8xf32>, vector<8x8xf32> -> vector<8x8xf32>
    %cst_63 = arith.constant 0.353553385 : f32
    %178 = vector.broadcast %cst_63 : f32 to vector<8x8xf32>
    %179 = arith.mulf %177, %178 : vector<8x8xf32>
    %180 = vector.broadcast %133 : vector<1x8xf32> to vector<8x8xf32>
    %181 = arith.addf %179, %180 : vector<8x8xf32>
    %cst_64 = arith.constant dense<0xFF800000> : vector<8xf32>
    %182 = vector.multi_reduction <maximumf>, %181, %cst_64 [1] : vector<8x8xf32> to vector<8xf32>
    %183 = vector.shape_cast %182 : vector<8xf32> to vector<8x1xf32>
    %184 = vector.broadcast %183 : vector<8x1xf32> to vector<8x8xf32>
    %185 = arith.subf %181, %184 : vector<8x8xf32>
    %186 = math.exp %185 : vector<8x8xf32>
    %cst_65 = arith.constant dense<0.000000e+00> : vector<8xf32>
    %187 = vector.multi_reduction <add>, %186, %cst_65 [1] : vector<8x8xf32> to vector<8xf32>
    %188 = vector.shape_cast %187 : vector<8xf32> to vector<8x1xf32>
    %189 = tpu.reciprocal %188 {approx = true} : vector<8x1xf32> -> vector<8x1xf32>
    %190 = vector.broadcast %189 : vector<8x1xf32> to vector<8x8xf32>
    %191 = arith.mulf %186, %190 : vector<8x8xf32>
    %cst_66 = arith.constant dense<0.000000e+00> : vector<8x8xf32>
    %192 = tpu.matmul %191, %176, %cst_66 {dimension_numbers = #tpu.dot_dimension_numbers<[1], [0], [0], [1], [0, 0, 1, 1], [], []>} : vector<8x8xf32>, vector<8x8xf32>, vector<8x8xf32> -> vector<8x8xf32>
    %c8_67 = arith.constant 8 : index
    %c16_68 = arith.constant 16 : index
    %193 = vector.load %arg6[%c8_67, %c16_68] : memref<16x32xf32, #tpu.memory_space<vmem>>, vector<8x8xf32>
    tpu.vector_store %arg6[%c8_67, %c16_68], %192 {strides = array<i32>} : memref<16x32xf32, #tpu.memory_space<vmem>>, vector<8x8xf32>,
    %194 = vector.extract_strided_slice %132 {offsets = [0, 24], sizes = [8, 8], strides = [1, 1]} : vector<8x96xf32> to vector<8x8xf32>
    %195 = vector.extract_strided_slice %132 {offsets = [0, 56], sizes = [8, 8], strides = [1, 1]} : vector<8x96xf32> to vector<8x8xf32>
    %196 = vector.extract_strided_slice %132 {offsets = [0, 88], sizes = [8, 8], strides = [1, 1]} : vector<8x96xf32> to vector<8x8xf32>
    %cst_69 = arith.constant dense<0.000000e+00> : vector<8x8xf32>
    %197 = tpu.matmul %194, %195, %cst_69 {dimension_numbers = #tpu.dot_dimension_numbers<[1], [1], [0], [0], [0, 0, 1, 0], [], []>} : vector<8x8xf32>, vector<8x8xf32>, vector<8x8xf32> -> vector<8x8xf32>
    %cst_70 = arith.constant 0.353553385 : f32
    %198 = vector.broadcast %cst_70 : f32 to vector<8x8xf32>
    %199 = arith.mulf %197, %198 : vector<8x8xf32>
    %200 = vector.broadcast %133 : vector<1x8xf32> to vector<8x8xf32>
    %201 = arith.addf %199, %200 : vector<8x8xf32>
    %cst_71 = arith.constant dense<0xFF800000> : vector<8xf32>
    %202 = vector.multi_reduction <maximumf>, %201, %cst_71 [1] : vector<8x8xf32> to vector<8xf32>
    %203 = vector.shape_cast %202 : vector<8xf32> to vector<8x1xf32>
    %204 = vector.broadcast %203 : vector<8x1xf32> to vector<8x8xf32>
    %205 = arith.subf %201, %204 : vector<8x8xf32>
    %206 = math.exp %205 : vector<8x8xf32>
    %cst_72 = arith.constant dense<0.000000e+00> : vector<8xf32>
    %207 = vector.multi_reduction <add>, %206, %cst_72 [1] : vector<8x8xf32> to vector<8xf32>
    %208 = vector.shape_cast %207 : vector<8xf32> to vector<8x1xf32>
    %209 = tpu.reciprocal %208 {approx = true} : vector<8x1xf32> -> vector<8x1xf32>
    %210 = vector.broadcast %209 : vector<8x1xf32> to vector<8x8xf32>
    %211 = arith.mulf %206, %210 : vector<8x8xf32>
    %cst_73 = arith.constant dense<0.000000e+00> : vector<8x8xf32>
    %212 = tpu.matmul %211, %196, %cst_73 {dimension_numbers = #tpu.dot_dimension_numbers<[1], [0], [0], [1], [0, 0, 1, 1], [], []>} : vector<8x8xf32>, vector<8x8xf32>, vector<8x8xf32> -> vector<8x8xf32>
    %c8_74 = arith.constant 8 : index
    %c24_75 = arith.constant 24 : index
    %213 = vector.load %arg6[%c8_74, %c24_75] : memref<16x32xf32, #tpu.memory_space<vmem>>, vector<8x8xf32>
    tpu.vector_store %arg6[%c8_74, %c24_75], %212 {strides = array<i32>} : memref<16x32xf32, #tpu.memory_space<vmem>>, vector<8x8xf32>,
    %c0_76 = arith.constant 0 : index
    %c0_77 = arith.constant 0 : index
    %214 = vector.load %arg6[%c0_76, %c0_77] : memref<16x32xf32, #tpu.memory_space<vmem>>, vector<16x32xf32>
    %cst_78 = arith.constant dense<0.000000e+00> : vector<16x32xf32>
    %215 = tpu.matmul %214, %19, %cst_78 {dimension_numbers = #tpu.dot_dimension_numbers<[1], [0], [0], [1], [0, 0, 1, 1], [], []>} : vector<16x32xf32>, vector<32x32xf32>, vector<16x32xf32> -> vector<16x32xf32>
    %216 = arith.addf %0, %215 : vector<16x32xf32>
    %217 = vector.broadcast %11 : vector<1x32xf32> to vector<16x32xf32>
    %218 = arith.addf %216, %217 : vector<16x32xf32>
    %cst_79 = arith.constant dense<0.000000e+00> : vector<16xf32>
    %219 = vector.multi_reduction <add>, %218, %cst_79 [1] : vector<16x32xf32> to vector<16xf32>
    %220 = vector.shape_cast %219 : vector<16xf32> to vector<16x1xf32>
    %cst_80 = arith.constant 3.200000e+01 : f32
    %221 = vector.broadcast %cst_80 : f32 to vector<16x1xf32>
    %222 = arith.divf %220, %221 : vector<16x1xf32>
    %223 = vector.broadcast %222 : vector<16x1xf32> to vector<16x32xf32>
    %224 = arith.subf %218, %223 : vector<16x32xf32>
    %225 = arith.mulf %224, %224 : vector<16x32xf32>
    %cst_81 = arith.constant dense<0.000000e+00> : vector<16xf32>
    %226 = vector.multi_reduction <add>, %225, %cst_81 [1] : vector<16x32xf32> to vector<16xf32>
    %227 = vector.shape_cast %226 : vector<16xf32> to vector<16x1xf32>
    %cst_82 = arith.constant 0.0322580636 : f32
    %228 = vector.broadcast %cst_82 : f32 to vector<16x1xf32>
    %229 = arith.mulf %227, %228 : vector<16x1xf32>
    %230 = math.sqrt %229 : vector<16x1xf32>
    %cst_83 = arith.constant 9.99999997E-7 : f32
    %231 = vector.broadcast %cst_83 : f32 to vector<16x1xf32>
    %232 = arith.addf %230, %231 : vector<16x1xf32>
    %233 = tpu.reciprocal %232 {approx = true} : vector<16x1xf32> -> vector<16x1xf32>
    %234 = vector.broadcast %222 : vector<16x1xf32> to vector<16x32xf32>
    %235 = arith.subf %218, %234 : vector<16x32xf32>
    %236 = vector.broadcast %12 : vector<1x32xf32> to vector<16x32xf32>
    %237 = vector.broadcast %233 : vector<16x1xf32> to vector<16x32xf32>
    %238 = arith.mulf %236, %237 : vector<16x32xf32>
    %239 = arith.mulf %235, %238 : vector<16x32xf32>
    %240 = vector.broadcast %13 : vector<1x32xf32> to vector<16x32xf32>
    %241 = arith.addf %239, %240 : vector<16x32xf32>
    %cst_84 = arith.constant dense<0.000000e+00> : vector<16x64xf32>
    %242 = tpu.matmul %241, %21, %cst_84 {dimension_numbers = #tpu.dot_dimension_numbers<[1], [0], [0], [1], [0, 0, 1, 1], [], []>} : vector<16x32xf32>, vector<32x64xf32>, vector<16x64xf32> -> vector<16x64xf32>
    %243 = vector.broadcast %14 : vector<1x64xf32> to vector<16x64xf32>
    %244 = arith.addf %242, %243 : vector<16x64xf32>
    %cst_85 = arith.constant 0.000000e+00 : f32
    %245 = vector.broadcast %cst_85 : f32 to vector<16x64xf32>
    %246 = arith.maximumf %244, %245 : vector<16x64xf32>
    %cst_86 = arith.constant dense<0.000000e+00> : vector<16x32xf32>
    %247 = tpu.matmul %246, %23, %cst_86 {dimension_numbers = #tpu.dot_dimension_numbers<[1], [0], [0], [1], [0, 0, 1, 1], [], []>} : vector<16x64xf32>, vector<64x32xf32>, vector<16x32xf32> -> vector<16x32xf32>
    %248 = arith.addf %218, %247 : vector<16x32xf32>
    %249 = vector.broadcast %15 : vector<1x32xf32> to vector<16x32xf32>
    %250 = arith.addf %248, %249 : vector<16x32xf32>
    %c1 = arith.constant 1 : index
    %c0_87 = arith.constant 0 : index
    %c0_88 = arith.constant 0 : index
    %251 = vector.load %arg4[%c1, %c0_87, %c0_88] : memref<3x8x96xf32, #tpu.memory_space<vmem>>, vector<1x8x96xf32>
    %252 = vector.shape_cast %251 : vector<1x8x96xf32> to vector<8x96xf32>
    %253 = vector.extract_strided_slice %252 {offsets = [0, 0], sizes = [1, 32], strides = [1, 1]} : vector<8x96xf32> to vector<1x32xf32>
    %254 = vector.extract_strided_slice %252 {offsets = [1, 0], sizes = [1, 32], strides = [1, 1]} : vector<8x96xf32> to vector<1x32xf32>
    %255 = vector.extract_strided_slice %252 {offsets = [2, 0], sizes = [1, 96], strides = [1, 1]} : vector<8x96xf32> to vector<1x96xf32>
    %256 = vector.extract_strided_slice %252 {offsets = [3, 0], sizes = [1, 32], strides = [1, 1]} : vector<8x96xf32> to vector<1x32xf32>
    %257 = vector.extract_strided_slice %252 {offsets = [4, 0], sizes = [1, 32], strides = [1, 1]} : vector<8x96xf32> to vector<1x32xf32>
    %258 = vector.extract_strided_slice %252 {offsets = [5, 0], sizes = [1, 32], strides = [1, 1]} : vector<8x96xf32> to vector<1x32xf32>
    %259 = vector.extract_strided_slice %252 {offsets = [6, 0], sizes = [1, 64], strides = [1, 1]} : vector<8x96xf32> to vector<1x64xf32>
    %260 = vector.extract_strided_slice %252 {offsets = [7, 0], sizes = [1, 32], strides = [1, 1]} : vector<8x96xf32> to vector<1x32xf32>
    %c1_89 = arith.constant 1 : index
    %c0_90 = arith.constant 0 : index
    %c0_91 = arith.constant 0 : index
    %261 = vector.load %arg2[%c1_89, %c0_90, %c0_91] : memref<2x32x192xf32, #tpu.memory_space<vmem>>, vector<1x32x96xf32>
    %262 = vector.shape_cast %261 : vector<1x32x96xf32> to vector<32x96xf32>
    %c1_92 = arith.constant 1 : index
    %c0_93 = arith.constant 0 : index
    %c96_94 = arith.constant 96 : index
    %263 = vector.load %arg2[%c1_92, %c0_93, %c96_94] : memref<2x32x192xf32, #tpu.memory_space<vmem>>, vector<1x32x32xf32>
    %264 = vector.shape_cast %263 : vector<1x32x32xf32> to vector<32x32xf32>
    %c1_95 = arith.constant 1 : index
    %c0_96 = arith.constant 0 : index
    %c128_97 = arith.constant 128 : index
    %265 = vector.load %arg2[%c1_95, %c0_96, %c128_97] : memref<2x32x192xf32, #tpu.memory_space<vmem>>, vector<1x32x64xf32>
    %266 = vector.shape_cast %265 : vector<1x32x64xf32> to vector<32x64xf32>
    %c1_98 = arith.constant 1 : index
    %c0_99 = arith.constant 0 : index
    %c0_100 = arith.constant 0 : index
    %267 = vector.load %arg3[%c1_98, %c0_99, %c0_100] : memref<2x64x32xf32, #tpu.memory_space<vmem>>, vector<1x64x32xf32>
    %268 = vector.shape_cast %267 : vector<1x64x32xf32> to vector<64x32xf32>
    %cst_101 = arith.constant dense<0.000000e+00> : vector<16xf32>
    %269 = vector.multi_reduction <add>, %250, %cst_101 [1] : vector<16x32xf32> to vector<16xf32>
    %270 = vector.shape_cast %269 : vector<16xf32> to vector<16x1xf32>
    %cst_102 = arith.constant 3.200000e+01 : f32
    %271 = vector.broadcast %cst_102 : f32 to vector<16x1xf32>
    %272 = arith.divf %270, %271 : vector<16x1xf32>
    %273 = vector.broadcast %272 : vector<16x1xf32> to vector<16x32xf32>
    %274 = arith.subf %250, %273 : vector<16x32xf32>
    %275 = arith.mulf %274, %274 : vector<16x32xf32>
    %cst_103 = arith.constant dense<0.000000e+00> : vector<16xf32>
    %276 = vector.multi_reduction <add>, %275, %cst_103 [1] : vector<16x32xf32> to vector<16xf32>
    %277 = vector.shape_cast %276 : vector<16xf32> to vector<16x1xf32>
    %cst_104 = arith.constant 0.0322580636 : f32
    %278 = vector.broadcast %cst_104 : f32 to vector<16x1xf32>
    %279 = arith.mulf %277, %278 : vector<16x1xf32>
    %280 = math.sqrt %279 : vector<16x1xf32>
    %cst_105 = arith.constant 9.99999997E-7 : f32
    %281 = vector.broadcast %cst_105 : f32 to vector<16x1xf32>
    %282 = arith.addf %280, %281 : vector<16x1xf32>
    %283 = tpu.reciprocal %282 {approx = true} : vector<16x1xf32> -> vector<16x1xf32>
    %284 = vector.broadcast %272 : vector<16x1xf32> to vector<16x32xf32>
    %285 = arith.subf %250, %284 : vector<16x32xf32>
    %286 = vector.broadcast %253 : vector<1x32xf32> to vector<16x32xf32>
    %287 = vector.broadcast %283 : vector<16x1xf32> to vector<16x32xf32>
    %288 = arith.mulf %286, %287 : vector<16x32xf32>
    %289 = arith.mulf %285, %288 : vector<16x32xf32>
    %290 = vector.broadcast %254 : vector<1x32xf32> to vector<16x32xf32>
    %291 = arith.addf %289, %290 : vector<16x32xf32>
    %cst_106 = arith.constant dense<0.000000e+00> : vector<16x96xf32>
    %292 = tpu.matmul %291, %262, %cst_106 {dimension_numbers = #tpu.dot_dimension_numbers<[1], [0], [0], [1], [0, 0, 1, 1], [], []>} : vector<16x32xf32>, vector<32x96xf32>, vector<16x96xf32> -> vector<16x96xf32>
    %293 = vector.broadcast %255 : vector<1x96xf32> to vector<16x96xf32>
    %294 = arith.addf %292, %293 : vector<16x96xf32>
    %295 = vector.extract_strided_slice %294 {offsets = [0, 0], sizes = [8, 96], strides = [1, 1]} : vector<16x96xf32> to vector<8x96xf32>
    %296 = vector.extract_strided_slice %5 {offsets = [0, 0], sizes = [1, 8], strides = [1, 1]} : vector<2x8xf32> to vector<1x8xf32>
    %297 = vector.extract_strided_slice %295 {offsets = [0, 0], sizes = [8, 8], strides = [1, 1]} : vector<8x96xf32> to vector<8x8xf32>
    %298 = vector.extract_strided_slice %295 {offsets = [0, 32], sizes = [8, 8], strides = [1, 1]} : vector<8x96xf32> to vector<8x8xf32>
    %299 = vector.extract_strided_slice %295 {offsets = [0, 64], sizes = [8, 8], strides = [1, 1]} : vector<8x96xf32> to vector<8x8xf32>
    %cst_107 = arith.constant dense<0.000000e+00> : vector<8x8xf32>
    %300 = tpu.matmul %297, %298, %cst_107 {dimension_numbers = #tpu.dot_dimension_numbers<[1], [1], [0], [0], [0, 0, 1, 0], [], []>} : vector<8x8xf32>, vector<8x8xf32>, vector<8x8xf32> -> vector<8x8xf32>
    %cst_108 = arith.constant 0.353553385 : f32
    %301 = vector.broadcast %cst_108 : f32 to vector<8x8xf32>
    %302 = arith.mulf %300, %301 : vector<8x8xf32>
    %303 = vector.broadcast %296 : vector<1x8xf32> to vector<8x8xf32>
    %304 = arith.addf %302, %303 : vector<8x8xf32>
    %cst_109 = arith.constant dense<0xFF800000> : vector<8xf32>
    %305 = vector.multi_reduction <maximumf>, %304, %cst_109 [1] : vector<8x8xf32> to vector<8xf32>
    %306 = vector.shape_cast %305 : vector<8xf32> to vector<8x1xf32>
    %307 = vector.broadcast %306 : vector<8x1xf32> to vector<8x8xf32>
    %308 = arith.subf %304, %307 : vector<8x8xf32>
    %309 = math.exp %308 : vector<8x8xf32>
    %cst_110 = arith.constant dense<0.000000e+00> : vector<8xf32>
    %310 = vector.multi_reduction <add>, %309, %cst_110 [1] : vector<8x8xf32> to vector<8xf32>
    %311 = vector.shape_cast %310 : vector<8xf32> to vector<8x1xf32>
    %312 = tpu.reciprocal %311 {approx = true} : vector<8x1xf32> -> vector<8x1xf32>
    %313 = vector.broadcast %312 : vector<8x1xf32> to vector<8x8xf32>
    %314 = arith.mulf %309, %313 : vector<8x8xf32>
    %cst_111 = arith.constant dense<0.000000e+00> : vector<8x8xf32>
    %315 = tpu.matmul %314, %299, %cst_111 {dimension_numbers = #tpu.dot_dimension_numbers<[1], [0], [0], [1], [0, 0, 1, 1], [], []>} : vector<8x8xf32>, vector<8x8xf32>, vector<8x8xf32> -> vector<8x8xf32>
    %c0_112 = arith.constant 0 : index
    %c0_113 = arith.constant 0 : index
    %316 = vector.load %arg6[%c0_112, %c0_113] : memref<16x32xf32, #tpu.memory_space<vmem>>, vector<8x8xf32>
    tpu.vector_store %arg6[%c0_112, %c0_113], %315 {strides = array<i32>} : memref<16x32xf32, #tpu.memory_space<vmem>>, vector<8x8xf32>,
    %317 = vector.extract_strided_slice %295 {offsets = [0, 8], sizes = [8, 8], strides = [1, 1]} : vector<8x96xf32> to vector<8x8xf32>
    %318 = vector.extract_strided_slice %295 {offsets = [0, 40], sizes = [8, 8], strides = [1, 1]} : vector<8x96xf32> to vector<8x8xf32>
    %319 = vector.extract_strided_slice %295 {offsets = [0, 72], sizes = [8, 8], strides = [1, 1]} : vector<8x96xf32> to vector<8x8xf32>
    %cst_114 = arith.constant dense<0.000000e+00> : vector<8x8xf32>
    %320 = tpu.matmul %317, %318, %cst_114 {dimension_numbers = #tpu.dot_dimension_numbers<[1], [1], [0], [0], [0, 0, 1, 0], [], []>} : vector<8x8xf32>, vector<8x8xf32>, vector<8x8xf32> -> vector<8x8xf32>
    %cst_115 = arith.constant 0.353553385 : f32
    %321 = vector.broadcast %cst_115 : f32 to vector<8x8xf32>
    %322 = arith.mulf %320, %321 : vector<8x8xf32>
    %323 = vector.broadcast %296 : vector<1x8xf32> to vector<8x8xf32>
    %324 = arith.addf %322, %323 : vector<8x8xf32>
    %cst_116 = arith.constant dense<0xFF800000> : vector<8xf32>
    %325 = vector.multi_reduction <maximumf>, %324, %cst_116 [1] : vector<8x8xf32> to vector<8xf32>
    %326 = vector.shape_cast %325 : vector<8xf32> to vector<8x1xf32>
    %327 = vector.broadcast %326 : vector<8x1xf32> to vector<8x8xf32>
    %328 = arith.subf %324, %327 : vector<8x8xf32>
    %329 = math.exp %328 : vector<8x8xf32>
    %cst_117 = arith.constant dense<0.000000e+00> : vector<8xf32>
    %330 = vector.multi_reduction <add>, %329, %cst_117 [1] : vector<8x8xf32> to vector<8xf32>
    %331 = vector.shape_cast %330 : vector<8xf32> to vector<8x1xf32>
    %332 = tpu.reciprocal %331 {approx = true} : vector<8x1xf32> -> vector<8x1xf32>
    %333 = vector.broadcast %332 : vector<8x1xf32> to vector<8x8xf32>
    %334 = arith.mulf %329, %333 : vector<8x8xf32>
    %cst_118 = arith.constant dense<0.000000e+00> : vector<8x8xf32>
    %335 = tpu.matmul %334, %319, %cst_118 {dimension_numbers = #tpu.dot_dimension_numbers<[1], [0], [0], [1], [0, 0, 1, 1], [], []>} : vector<8x8xf32>, vector<8x8xf32>, vector<8x8xf32> -> vector<8x8xf32>
    %c0_119 = arith.constant 0 : index
    %c8_120 = arith.constant 8 : index
    %336 = vector.load %arg6[%c0_119, %c8_120] : memref<16x32xf32, #tpu.memory_space<vmem>>, vector<8x8xf32>
    tpu.vector_store %arg6[%c0_119, %c8_120], %335 {strides = array<i32>} : memref<16x32xf32, #tpu.memory_space<vmem>>, vector<8x8xf32>,
    %337 = vector.extract_strided_slice %295 {offsets = [0, 16], sizes = [8, 8], strides = [1, 1]} : vector<8x96xf32> to vector<8x8xf32>
    %338 = vector.extract_strided_slice %295 {offsets = [0, 48], sizes = [8, 8], strides = [1, 1]} : vector<8x96xf32> to vector<8x8xf32>
    %339 = vector.extract_strided_slice %295 {offsets = [0, 80], sizes = [8, 8], strides = [1, 1]} : vector<8x96xf32> to vector<8x8xf32>
    %cst_121 = arith.constant dense<0.000000e+00> : vector<8x8xf32>
    %340 = tpu.matmul %337, %338, %cst_121 {dimension_numbers = #tpu.dot_dimension_numbers<[1], [1], [0], [0], [0, 0, 1, 0], [], []>} : vector<8x8xf32>, vector<8x8xf32>, vector<8x8xf32> -> vector<8x8xf32>
    %cst_122 = arith.constant 0.353553385 : f32
    %341 = vector.broadcast %cst_122 : f32 to vector<8x8xf32>
    %342 = arith.mulf %340, %341 : vector<8x8xf32>
    %343 = vector.broadcast %296 : vector<1x8xf32> to vector<8x8xf32>
    %344 = arith.addf %342, %343 : vector<8x8xf32>
    %cst_123 = arith.constant dense<0xFF800000> : vector<8xf32>
    %345 = vector.multi_reduction <maximumf>, %344, %cst_123 [1] : vector<8x8xf32> to vector<8xf32>
    %346 = vector.shape_cast %345 : vector<8xf32> to vector<8x1xf32>
    %347 = vector.broadcast %346 : vector<8x1xf32> to vector<8x8xf32>
    %348 = arith.subf %344, %347 : vector<8x8xf32>
    %349 = math.exp %348 : vector<8x8xf32>
    %cst_124 = arith.constant dense<0.000000e+00> : vector<8xf32>
    %350 = vector.multi_reduction <add>, %349, %cst_124 [1] : vector<8x8xf32> to vector<8xf32>
    %351 = vector.shape_cast %350 : vector<8xf32> to vector<8x1xf32>
    %352 = tpu.reciprocal %351 {approx = true} : vector<8x1xf32> -> vector<8x1xf32>
    %353 = vector.broadcast %352 : vector<8x1xf32> to vector<8x8xf32>
    %354 = arith.mulf %349, %353 : vector<8x8xf32>
    %cst_125 = arith.constant dense<0.000000e+00> : vector<8x8xf32>
    %355 = tpu.matmul %354, %339, %cst_125 {dimension_numbers = #tpu.dot_dimension_numbers<[1], [0], [0], [1], [0, 0, 1, 1], [], []>} : vector<8x8xf32>, vector<8x8xf32>, vector<8x8xf32> -> vector<8x8xf32>
    %c0_126 = arith.constant 0 : index
    %c16_127 = arith.constant 16 : index
    %356 = vector.load %arg6[%c0_126, %c16_127] : memref<16x32xf32, #tpu.memory_space<vmem>>, vector<8x8xf32>
    tpu.vector_store %arg6[%c0_126, %c16_127], %355 {strides = array<i32>} : memref<16x32xf32, #tpu.memory_space<vmem>>, vector<8x8xf32>,
    %357 = vector.extract_strided_slice %295 {offsets = [0, 24], sizes = [8, 8], strides = [1, 1]} : vector<8x96xf32> to vector<8x8xf32>
    %358 = vector.extract_strided_slice %295 {offsets = [0, 56], sizes = [8, 8], strides = [1, 1]} : vector<8x96xf32> to vector<8x8xf32>
    %359 = vector.extract_strided_slice %295 {offsets = [0, 88], sizes = [8, 8], strides = [1, 1]} : vector<8x96xf32> to vector<8x8xf32>
    %cst_128 = arith.constant dense<0.000000e+00> : vector<8x8xf32>
    %360 = tpu.matmul %357, %358, %cst_128 {dimension_numbers = #tpu.dot_dimension_numbers<[1], [1], [0], [0], [0, 0, 1, 0], [], []>} : vector<8x8xf32>, vector<8x8xf32>, vector<8x8xf32> -> vector<8x8xf32>
    %cst_129 = arith.constant 0.353553385 : f32
    %361 = vector.broadcast %cst_129 : f32 to vector<8x8xf32>
    %362 = arith.mulf %360, %361 : vector<8x8xf32>
    %363 = vector.broadcast %296 : vector<1x8xf32> to vector<8x8xf32>
    %364 = arith.addf %362, %363 : vector<8x8xf32>
    %cst_130 = arith.constant dense<0xFF800000> : vector<8xf32>
    %365 = vector.multi_reduction <maximumf>, %364, %cst_130 [1] : vector<8x8xf32> to vector<8xf32>
    %366 = vector.shape_cast %365 : vector<8xf32> to vector<8x1xf32>
    %367 = vector.broadcast %366 : vector<8x1xf32> to vector<8x8xf32>
    %368 = arith.subf %364, %367 : vector<8x8xf32>
    %369 = math.exp %368 : vector<8x8xf32>
    %cst_131 = arith.constant dense<0.000000e+00> : vector<8xf32>
    %370 = vector.multi_reduction <add>, %369, %cst_131 [1] : vector<8x8xf32> to vector<8xf32>
    %371 = vector.shape_cast %370 : vector<8xf32> to vector<8x1xf32>
    %372 = tpu.reciprocal %371 {approx = true} : vector<8x1xf32> -> vector<8x1xf32>
    %373 = vector.broadcast %372 : vector<8x1xf32> to vector<8x8xf32>
    %374 = arith.mulf %369, %373 : vector<8x8xf32>
    %cst_132 = arith.constant dense<0.000000e+00> : vector<8x8xf32>
    %375 = tpu.matmul %374, %359, %cst_132 {dimension_numbers = #tpu.dot_dimension_numbers<[1], [0], [0], [1], [0, 0, 1, 1], [], []>} : vector<8x8xf32>, vector<8x8xf32>, vector<8x8xf32> -> vector<8x8xf32>
    %c0_133 = arith.constant 0 : index
    %c24_134 = arith.constant 24 : index
    %376 = vector.load %arg6[%c0_133, %c24_134] : memref<16x32xf32, #tpu.memory_space<vmem>>, vector<8x8xf32>
    tpu.vector_store %arg6[%c0_133, %c24_134], %375 {strides = array<i32>} : memref<16x32xf32, #tpu.memory_space<vmem>>, vector<8x8xf32>,
    %377 = vector.extract_strided_slice %294 {offsets = [8, 0], sizes = [8, 96], strides = [1, 1]} : vector<16x96xf32> to vector<8x96xf32>
    %378 = vector.extract_strided_slice %5 {offsets = [1, 0], sizes = [1, 8], strides = [1, 1]} : vector<2x8xf32> to vector<1x8xf32>
    %379 = vector.extract_strided_slice %377 {offsets = [0, 0], sizes = [8, 8], strides = [1, 1]} : vector<8x96xf32> to vector<8x8xf32>
    %380 = vector.extract_strided_slice %377 {offsets = [0, 32], sizes = [8, 8], strides = [1, 1]} : vector<8x96xf32> to vector<8x8xf32>
    %381 = vector.extract_strided_slice %377 {offsets = [0, 64], sizes = [8, 8], strides = [1, 1]} : vector<8x96xf32> to vector<8x8xf32>
    %cst_135 = arith.constant dense<0.000000e+00> : vector<8x8xf32>
    %382 = tpu.matmul %379, %380, %cst_135 {dimension_numbers = #tpu.dot_dimension_numbers<[1], [1], [0], [0], [0, 0, 1, 0], [], []>} : vector<8x8xf32>, vector<8x8xf32>, vector<8x8xf32> -> vector<8x8xf32>
    %cst_136 = arith.constant 0.353553385 : f32
    %383 = vector.broadcast %cst_136 : f32 to vector<8x8xf32>
    %384 = arith.mulf %382, %383 : vector<8x8xf32>
    %385 = vector.broadcast %378 : vector<1x8xf32> to vector<8x8xf32>
    %386 = arith.addf %384, %385 : vector<8x8xf32>
    %cst_137 = arith.constant dense<0xFF800000> : vector<8xf32>
    %387 = vector.multi_reduction <maximumf>, %386, %cst_137 [1] : vector<8x8xf32> to vector<8xf32>
    %388 = vector.shape_cast %387 : vector<8xf32> to vector<8x1xf32>
    %389 = vector.broadcast %388 : vector<8x1xf32> to vector<8x8xf32>
    %390 = arith.subf %386, %389 : vector<8x8xf32>
    %391 = math.exp %390 : vector<8x8xf32>
    %cst_138 = arith.constant dense<0.000000e+00> : vector<8xf32>
    %392 = vector.multi_reduction <add>, %391, %cst_138 [1] : vector<8x8xf32> to vector<8xf32>
    %393 = vector.shape_cast %392 : vector<8xf32> to vector<8x1xf32>
    %394 = tpu.reciprocal %393 {approx = true} : vector<8x1xf32> -> vector<8x1xf32>
    %395 = vector.broadcast %394 : vector<8x1xf32> to vector<8x8xf32>
    %396 = arith.mulf %391, %395 : vector<8x8xf32>
    %cst_139 = arith.constant dense<0.000000e+00> : vector<8x8xf32>
    %397 = tpu.matmul %396, %381, %cst_139 {dimension_numbers = #tpu.dot_dimension_numbers<[1], [0], [0], [1], [0, 0, 1, 1], [], []>} : vector<8x8xf32>, vector<8x8xf32>, vector<8x8xf32> -> vector<8x8xf32>
    %c8_140 = arith.constant 8 : index
    %c0_141 = arith.constant 0 : index
    %398 = vector.load %arg6[%c8_140, %c0_141] : memref<16x32xf32, #tpu.memory_space<vmem>>, vector<8x8xf32>
    tpu.vector_store %arg6[%c8_140, %c0_141], %397 {strides = array<i32>} : memref<16x32xf32, #tpu.memory_space<vmem>>, vector<8x8xf32>,
    %399 = vector.extract_strided_slice %377 {offsets = [0, 8], sizes = [8, 8], strides = [1, 1]} : vector<8x96xf32> to vector<8x8xf32>
    %400 = vector.extract_strided_slice %377 {offsets = [0, 40], sizes = [8, 8], strides = [1, 1]} : vector<8x96xf32> to vector<8x8xf32>
    %401 = vector.extract_strided_slice %377 {offsets = [0, 72], sizes = [8, 8], strides = [1, 1]} : vector<8x96xf32> to vector<8x8xf32>
    %cst_142 = arith.constant dense<0.000000e+00> : vector<8x8xf32>
    %402 = tpu.matmul %399, %400, %cst_142 {dimension_numbers = #tpu.dot_dimension_numbers<[1], [1], [0], [0], [0, 0, 1, 0], [], []>} : vector<8x8xf32>, vector<8x8xf32>, vector<8x8xf32> -> vector<8x8xf32>
    %cst_143 = arith.constant 0.353553385 : f32
    %403 = vector.broadcast %cst_143 : f32 to vector<8x8xf32>
    %404 = arith.mulf %402, %403 : vector<8x8xf32>
    %405 = vector.broadcast %378 : vector<1x8xf32> to vector<8x8xf32>
    %406 = arith.addf %404, %405 : vector<8x8xf32>
    %cst_144 = arith.constant dense<0xFF800000> : vector<8xf32>
    %407 = vector.multi_reduction <maximumf>, %406, %cst_144 [1] : vector<8x8xf32> to vector<8xf32>
    %408 = vector.shape_cast %407 : vector<8xf32> to vector<8x1xf32>
    %409 = vector.broadcast %408 : vector<8x1xf32> to vector<8x8xf32>
    %410 = arith.subf %406, %409 : vector<8x8xf32>
    %411 = math.exp %410 : vector<8x8xf32>
    %cst_145 = arith.constant dense<0.000000e+00> : vector<8xf32>
    %412 = vector.multi_reduction <add>, %411, %cst_145 [1] : vector<8x8xf32> to vector<8xf32>
    %413 = vector.shape_cast %412 : vector<8xf32> to vector<8x1xf32>
    %414 = tpu.reciprocal %413 {approx = true} : vector<8x1xf32> -> vector<8x1xf32>
    %415 = vector.broadcast %414 : vector<8x1xf32> to vector<8x8xf32>
    %416 = arith.mulf %411, %415 : vector<8x8xf32>
    %cst_146 = arith.constant dense<0.000000e+00> : vector<8x8xf32>
    %417 = tpu.matmul %416, %401, %cst_146 {dimension_numbers = #tpu.dot_dimension_numbers<[1], [0], [0], [1], [0, 0, 1, 1], [], []>} : vector<8x8xf32>, vector<8x8xf32>, vector<8x8xf32> -> vector<8x8xf32>
    %c8_147 = arith.constant 8 : index
    %c8_148 = arith.constant 8 : index
    %418 = vector.load %arg6[%c8_147, %c8_148] : memref<16x32xf32, #tpu.memory_space<vmem>>, vector<8x8xf32>
    tpu.vector_store %arg6[%c8_147, %c8_148], %417 {strides = array<i32>} : memref<16x32xf32, #tpu.memory_space<vmem>>, vector<8x8xf32>,
    %419 = vector.extract_strided_slice %377 {offsets = [0, 16], sizes = [8, 8], strides = [1, 1]} : vector<8x96xf32> to vector<8x8xf32>
    %420 = vector.extract_strided_slice %377 {offsets = [0, 48], sizes = [8, 8], strides = [1, 1]} : vector<8x96xf32> to vector<8x8xf32>
    %421 = vector.extract_strided_slice %377 {offsets = [0, 80], sizes = [8, 8], strides = [1, 1]} : vector<8x96xf32> to vector<8x8xf32>
    %cst_149 = arith.constant dense<0.000000e+00> : vector<8x8xf32>
    %422 = tpu.matmul %419, %420, %cst_149 {dimension_numbers = #tpu.dot_dimension_numbers<[1], [1], [0], [0], [0, 0, 1, 0], [], []>} : vector<8x8xf32>, vector<8x8xf32>, vector<8x8xf32> -> vector<8x8xf32>
    %cst_150 = arith.constant 0.353553385 : f32
    %423 = vector.broadcast %cst_150 : f32 to vector<8x8xf32>
    %424 = arith.mulf %422, %423 : vector<8x8xf32>
    %425 = vector.broadcast %378 : vector<1x8xf32> to vector<8x8xf32>
    %426 = arith.addf %424, %425 : vector<8x8xf32>
    %cst_151 = arith.constant dense<0xFF800000> : vector<8xf32>
    %427 = vector.multi_reduction <maximumf>, %426, %cst_151 [1] : vector<8x8xf32> to vector<8xf32>
    %428 = vector.shape_cast %427 : vector<8xf32> to vector<8x1xf32>
    %429 = vector.broadcast %428 : vector<8x1xf32> to vector<8x8xf32>
    %430 = arith.subf %426, %429 : vector<8x8xf32>
    %431 = math.exp %430 : vector<8x8xf32>
    %cst_152 = arith.constant dense<0.000000e+00> : vector<8xf32>
    %432 = vector.multi_reduction <add>, %431, %cst_152 [1] : vector<8x8xf32> to vector<8xf32>
    %433 = vector.shape_cast %432 : vector<8xf32> to vector<8x1xf32>
    %434 = tpu.reciprocal %433 {approx = true} : vector<8x1xf32> -> vector<8x1xf32>
    %435 = vector.broadcast %434 : vector<8x1xf32> to vector<8x8xf32>
    %436 = arith.mulf %431, %435 : vector<8x8xf32>
    %cst_153 = arith.constant dense<0.000000e+00> : vector<8x8xf32>
    %437 = tpu.matmul %436, %421, %cst_153 {dimension_numbers = #tpu.dot_dimension_numbers<[1], [0], [0], [1], [0, 0, 1, 1], [], []>} : vector<8x8xf32>, vector<8x8xf32>, vector<8x8xf32> -> vector<8x8xf32>
    %c8_154 = arith.constant 8 : index
    %c16_155 = arith.constant 16 : index
    %438 = vector.load %arg6[%c8_154, %c16_155] : memref<16x32xf32, #tpu.memory_space<vmem>>, vector<8x8xf32>
    tpu.vector_store %arg6[%c8_154, %c16_155], %437 {strides = array<i32>} : memref<16x32xf32, #tpu.memory_space<vmem>>, vector<8x8xf32>,
    %439 = vector.extract_strided_slice %377 {offsets = [0, 24], sizes = [8, 8], strides = [1, 1]} : vector<8x96xf32> to vector<8x8xf32>
    %440 = vector.extract_strided_slice %377 {offsets = [0, 56], sizes = [8, 8], strides = [1, 1]} : vector<8x96xf32> to vector<8x8xf32>
    %441 = vector.extract_strided_slice %377 {offsets = [0, 88], sizes = [8, 8], strides = [1, 1]} : vector<8x96xf32> to vector<8x8xf32>
    %cst_156 = arith.constant dense<0.000000e+00> : vector<8x8xf32>
    %442 = tpu.matmul %439, %440, %cst_156 {dimension_numbers = #tpu.dot_dimension_numbers<[1], [1], [0], [0], [0, 0, 1, 0], [], []>} : vector<8x8xf32>, vector<8x8xf32>, vector<8x8xf32> -> vector<8x8xf32>
    %cst_157 = arith.constant 0.353553385 : f32
    %443 = vector.broadcast %cst_157 : f32 to vector<8x8xf32>
    %444 = arith.mulf %442, %443 : vector<8x8xf32>
    %445 = vector.broadcast %378 : vector<1x8xf32> to vector<8x8xf32>
    %446 = arith.addf %444, %445 : vector<8x8xf32>
    %cst_158 = arith.constant dense<0xFF800000> : vector<8xf32>
    %447 = vector.multi_reduction <maximumf>, %446, %cst_158 [1] : vector<8x8xf32> to vector<8xf32>
    %448 = vector.shape_cast %447 : vector<8xf32> to vector<8x1xf32>
    %449 = vector.broadcast %448 : vector<8x1xf32> to vector<8x8xf32>
    %450 = arith.subf %446, %449 : vector<8x8xf32>
    %451 = math.exp %450 : vector<8x8xf32>
    %cst_159 = arith.constant dense<0.000000e+00> : vector<8xf32>
    %452 = vector.multi_reduction <add>, %451, %cst_159 [1] : vector<8x8xf32> to vector<8xf32>
    %453 = vector.shape_cast %452 : vector<8xf32> to vector<8x1xf32>
    %454 = tpu.reciprocal %453 {approx = true} : vector<8x1xf32> -> vector<8x1xf32>
    %455 = vector.broadcast %454 : vector<8x1xf32> to vector<8x8xf32>
    %456 = arith.mulf %451, %455 : vector<8x8xf32>
    %cst_160 = arith.constant dense<0.000000e+00> : vector<8x8xf32>
    %457 = tpu.matmul %456, %441, %cst_160 {dimension_numbers = #tpu.dot_dimension_numbers<[1], [0], [0], [1], [0, 0, 1, 1], [], []>} : vector<8x8xf32>, vector<8x8xf32>, vector<8x8xf32> -> vector<8x8xf32>
    %c8_161 = arith.constant 8 : index
    %c24_162 = arith.constant 24 : index
    %458 = vector.load %arg6[%c8_161, %c24_162] : memref<16x32xf32, #tpu.memory_space<vmem>>, vector<8x8xf32>
    tpu.vector_store %arg6[%c8_161, %c24_162], %457 {strides = array<i32>} : memref<16x32xf32, #tpu.memory_space<vmem>>, vector<8x8xf32>,
    %c0_163 = arith.constant 0 : index
    %c0_164 = arith.constant 0 : index
    %459 = vector.load %arg6[%c0_163, %c0_164] : memref<16x32xf32, #tpu.memory_space<vmem>>, vector<16x32xf32>
    %cst_165 = arith.constant dense<0.000000e+00> : vector<16x32xf32>
    %460 = tpu.matmul %459, %264, %cst_165 {dimension_numbers = #tpu.dot_dimension_numbers<[1], [0], [0], [1], [0, 0, 1, 1], [], []>} : vector<16x32xf32>, vector<32x32xf32>, vector<16x32xf32> -> vector<16x32xf32>
    %461 = arith.addf %250, %460 : vector<16x32xf32>
    %462 = vector.broadcast %256 : vector<1x32xf32> to vector<16x32xf32>
    %463 = arith.addf %461, %462 : vector<16x32xf32>
    %cst_166 = arith.constant dense<0.000000e+00> : vector<16xf32>
    %464 = vector.multi_reduction <add>, %463, %cst_166 [1] : vector<16x32xf32> to vector<16xf32>
    %465 = vector.shape_cast %464 : vector<16xf32> to vector<16x1xf32>
    %cst_167 = arith.constant 3.200000e+01 : f32
    %466 = vector.broadcast %cst_167 : f32 to vector<16x1xf32>
    %467 = arith.divf %465, %466 : vector<16x1xf32>
    %468 = vector.broadcast %467 : vector<16x1xf32> to vector<16x32xf32>
    %469 = arith.subf %463, %468 : vector<16x32xf32>
    %470 = arith.mulf %469, %469 : vector<16x32xf32>
    %cst_168 = arith.constant dense<0.000000e+00> : vector<16xf32>
    %471 = vector.multi_reduction <add>, %470, %cst_168 [1] : vector<16x32xf32> to vector<16xf32>
    %472 = vector.shape_cast %471 : vector<16xf32> to vector<16x1xf32>
    %cst_169 = arith.constant 0.0322580636 : f32
    %473 = vector.broadcast %cst_169 : f32 to vector<16x1xf32>
    %474 = arith.mulf %472, %473 : vector<16x1xf32>
    %475 = math.sqrt %474 : vector<16x1xf32>
    %cst_170 = arith.constant 9.99999997E-7 : f32
    %476 = vector.broadcast %cst_170 : f32 to vector<16x1xf32>
    %477 = arith.addf %475, %476 : vector<16x1xf32>
    %478 = tpu.reciprocal %477 {approx = true} : vector<16x1xf32> -> vector<16x1xf32>
    %479 = vector.broadcast %467 : vector<16x1xf32> to vector<16x32xf32>
    %480 = arith.subf %463, %479 : vector<16x32xf32>
    %481 = vector.broadcast %257 : vector<1x32xf32> to vector<16x32xf32>
    %482 = vector.broadcast %478 : vector<16x1xf32> to vector<16x32xf32>
    %483 = arith.mulf %481, %482 : vector<16x32xf32>
    %484 = arith.mulf %480, %483 : vector<16x32xf32>
    %485 = vector.broadcast %258 : vector<1x32xf32> to vector<16x32xf32>
    %486 = arith.addf %484, %485 : vector<16x32xf32>
    %cst_171 = arith.constant dense<0.000000e+00> : vector<16x64xf32>
    %487 = tpu.matmul %486, %266, %cst_171 {dimension_numbers = #tpu.dot_dimension_numbers<[1], [0], [0], [1], [0, 0, 1, 1], [], []>} : vector<16x32xf32>, vector<32x64xf32>, vector<16x64xf32> -> vector<16x64xf32>
    %488 = vector.broadcast %259 : vector<1x64xf32> to vector<16x64xf32>
    %489 = arith.addf %487, %488 : vector<16x64xf32>
    %cst_172 = arith.constant 0.000000e+00 : f32
    %490 = vector.broadcast %cst_172 : f32 to vector<16x64xf32>
    %491 = arith.maximumf %489, %490 : vector<16x64xf32>
    %cst_173 = arith.constant dense<0.000000e+00> : vector<16x32xf32>
    %492 = tpu.matmul %491, %268, %cst_173 {dimension_numbers = #tpu.dot_dimension_numbers<[1], [0], [0], [1], [0, 0, 1, 1], [], []>} : vector<16x64xf32>, vector<64x32xf32>, vector<16x32xf32> -> vector<16x32xf32>
    %493 = arith.addf %463, %492 : vector<16x32xf32>
    %494 = vector.broadcast %260 : vector<1x32xf32> to vector<16x32xf32>
    %495 = arith.addf %493, %494 : vector<16x32xf32>
    %c2 = arith.constant 2 : index
    %c0_174 = arith.constant 0 : index
    %c0_175 = arith.constant 0 : index
    %496 = vector.load %arg4[%c2, %c0_174, %c0_175] : memref<3x8x96xf32, #tpu.memory_space<vmem>>, vector<1x8x96xf32>
    %497 = vector.shape_cast %496 : vector<1x8x96xf32> to vector<8x96xf32>
    %498 = vector.extract_strided_slice %497 {offsets = [0, 0], sizes = [1, 32], strides = [1, 1]} : vector<8x96xf32> to vector<1x32xf32>
    %499 = vector.extract_strided_slice %497 {offsets = [1, 0], sizes = [1, 32], strides = [1, 1]} : vector<8x96xf32> to vector<1x32xf32>
    %cst_176 = arith.constant dense<0.000000e+00> : vector<16xf32>
    %500 = vector.multi_reduction <add>, %495, %cst_176 [1] : vector<16x32xf32> to vector<16xf32>
    %501 = vector.shape_cast %500 : vector<16xf32> to vector<16x1xf32>
    %cst_177 = arith.constant 3.200000e+01 : f32
    %502 = vector.broadcast %cst_177 : f32 to vector<16x1xf32>
    %503 = arith.divf %501, %502 : vector<16x1xf32>
    %504 = vector.broadcast %503 : vector<16x1xf32> to vector<16x32xf32>
    %505 = arith.subf %495, %504 : vector<16x32xf32>
    %506 = arith.mulf %505, %505 : vector<16x32xf32>
    %cst_178 = arith.constant dense<0.000000e+00> : vector<16xf32>
    %507 = vector.multi_reduction <add>, %506, %cst_178 [1] : vector<16x32xf32> to vector<16xf32>
    %508 = vector.shape_cast %507 : vector<16xf32> to vector<16x1xf32>
    %cst_179 = arith.constant 0.0322580636 : f32
    %509 = vector.broadcast %cst_179 : f32 to vector<16x1xf32>
    %510 = arith.mulf %508, %509 : vector<16x1xf32>
    %511 = math.sqrt %510 : vector<16x1xf32>
    %cst_180 = arith.constant 9.99999997E-7 : f32
    %512 = vector.broadcast %cst_180 : f32 to vector<16x1xf32>
    %513 = arith.addf %511, %512 : vector<16x1xf32>
    %514 = tpu.reciprocal %513 {approx = true} : vector<16x1xf32> -> vector<16x1xf32>
    %515 = vector.broadcast %503 : vector<16x1xf32> to vector<16x32xf32>
    %516 = arith.subf %495, %515 : vector<16x32xf32>
    %517 = vector.broadcast %498 : vector<1x32xf32> to vector<16x32xf32>
    %518 = vector.broadcast %514 : vector<16x1xf32> to vector<16x32xf32>
    %519 = arith.mulf %517, %518 : vector<16x32xf32>
    %520 = arith.mulf %516, %519 : vector<16x32xf32>
    %521 = vector.broadcast %499 : vector<1x32xf32> to vector<16x32xf32>
    %522 = arith.addf %520, %521 : vector<16x32xf32>
    %c0_181 = arith.constant 0 : index
    %c0_182 = arith.constant 0 : index
    %523 = vector.load %arg5[%c0_181, %c0_182] : memref<16x32xf32, #tpu.memory_space<vmem>>, vector<16x32xf32>
    tpu.vector_store %arg5[%c0_181, %c0_182], %522 {strides = array<i32>} : memref<16x32xf32, #tpu.memory_space<vmem>>, vector<16x32xf32>,
    return
  }
}

</mosaic_0001>

<bundles_post_ra>
// kernel: tpu_custom_call.1
= control target key start
LH: loop header
LB: loop body
LE: loop exit
PB: predicated region body
PF: predicated region fallthrough
CT: control target
= control target key end

     0   :  { %vm43_vm0 = vcmask 261120   ;;  %s5287_s0 = inlined_call_operand.vmem [shape: f32[16,32], index: 0, kind: input, shape index: {}]   ;;  %s5288_s1 = inlined_call_operand.vmem [shape: f32[2,8], index: 1, kind: input, shape index: {}]   ;;  %s5289_s2 = inlined_call_operand.vmem [shape: f32[2,32,192], index: 2, kind: input, shape index: {}]   ;;  %s5290_s3 = inlined_call_operand.vmem [shape: f32[2,64,32], index: 3, kind: input, shape index: {}]   ;;  %s5291_s4 = inlined_call_operand.vmem [shape: f32[3,8,96], index: 4, kind: input, shape index: {}]   ;;  %s5292_s5 = inlined_call_operand.hbm [shape: f32[16,32], index: 5, kind: output, shape index: {}]  }
   0x1   :  { %v4592_v0 = vld [vmem:[%s5287_s0] sm:$0xff]  ;;  %v4597_v1 = vld [vmem:[%s5287_s0 + $0x8] sm:$0xff] }
   0x2   :  { %10 = vsyncpa [#allocation4], 0  ;;  %v44_v2 = vsel %vm43_vm0, %v4592_v0, 0.0  ;;  %v47_v3 = vsel %vm43_vm0, %v4597_v1, 0.0  ;;  %v4610_v14 = vld [vmem:[%s5289_s2] sm:$0xff]  ;;  %v4615_v15 = vld [vmem:[%s5289_s2 + $0x10] sm:$0xff]  ;;  %v83_v28 = vlaneseq }
   0x3   :  { %45 = vadd.xlane.f32.xlu0 %v44_v2  ;;  %v4620_v16 = vld [vmem:[%s5289_s2 + $0x20] sm:$0xff]  ;;  %v4392_v17 = vpack.i.bf16 %v4615_v15, %v4610_v14  ;;  %v4293_v18 = vpack.c.bf16 %v4615_v15, %v4610_v14  ;;  %v4629_v19 = vld [vmem:[%s5289_s2 + $0x30] sm:$0xff]  ;;  %v4540_v52 = vmov 0.0   ;;  %vm4541_vm5 = vmmov 0   ;;  %s4542_s6 = smov 88   ;;  %s4543_s7 = smov 96  }
   0x4   :  { %v4297_v20 = vpack.c.bf16 %v4629_v19, %v4620_v16  ;;  %v4633_v35 = vshrl.u32 %v83_v28, 7  ;;  %v4641_v40 = vld [vmem:[%s5291_s4] sm:$0xff]  ;;  %4050 = vmatprep.subr.mxu0 %v4540_v52  ;;  %4052 = vmatprep.mubr.msk.f32.mxu0 %vm4541_vm5, %v4540_v52  ;;  %s4544_s8 = smov 120   ;;  %s4545_s9 = smov 112   ;;  %vm185_vm6 = vcmask 64512   ;;  %vm525_vm7 = vcmask 130112  }
   0x5   :  { %4294 = vmatprep.subr.bf16.mxu1 %v4293_v18  ;;  %s4546_s10 = smov 80   ;;  %s4547_s11 = smov 104   ;;  %vm698_vm8 = vcmask 195712   ;;  %vm871_vm9 = vcmask 261312   ;;  %vm1806_vm14 = vcmask 523264  }
   0x6   :  { %4296 = vmatpush3.bf16.msra.mxu1 %v4293_v18  ;;  %v4636_v39 = vsub.s32 0, %v4633_v35  ;;  %v4646_v42 = vsub.s32 1, %v4633_v35  ;;  %v99_v53 = vsub.s32 2, %v4633_v35  ;;  %s4548_s12 = smov 72   ;;  %s4550_s15 = smov 48  }
   0x7   :  { %48 = vadd.xlane.f32.xlu0 %v47_v3  ;;  %4298 = vmatprep.subr.bf16.mxu1 %v4297_v20  ;;  %s4551_s16 = smov 40   ;;  %s4552_s17 = smov 56  }
   0x8   :  { %v86_v41 = vrot.slane %v4641_v40, %v4636_v39  ;;  %v94_v45 = vrot.slane %v4641_v40, %v4646_v42  ;;  %v100_v54 = vrot.slane %v4641_v40, %v99_v53  ;;  %s4553_s18 = smov 32   ;;  %s4554_s19 = smov 8  }
   0x9   :  { %s4555_s20 = smov 16   ;;  %s4556_s21 = smov 24  }
   0xa   :  { %4300 = vmatpush3.bf16.msra.mxu1 %v4297_v20  ;;  %s4557_s29 = smov [#allocation3]  }
   0xb   :  { %4040 = vmatprep.subr.mxu1 %v4540_v52  ;;  %s3815_s30 = sshll.u32 %s4557_s29, 4  ;;  %s3816_s30 = int_to_ptr.vmem [resolvable:$true] %s3815_s30 }
   0xc   :  { %p4521_p1 = scmp.lt.s32.totalorder %s3816_s30, %s3816_s30 }
  0x90   :  { %v46_v4 = vpop.xlane.xlu0 %45 }
  0x91   :  { %v51_v5 = vmul.f32 0.03125, %v46_v4 }
  0x93   :  { %v53_v6 = vsub.f32 %v4592_v0, %v51_v5 }
  0x94   :  { %v49_v7 = vpop.xlane.xlu0 %48 }
  0x95   :  { %v52_v8 = vmul.f32 0.03125, %v49_v7  ;;  %v55_v9 = vmul.f32 %v53_v6, %v53_v6 }
  0x97   :  { %v54_v10 = vsub.f32 %v4597_v1, %v52_v8  ;;  %v57_v11 = vsel %vm43_vm0, %v55_v9, 0.0 }
  0x98   :  { %58 = vadd.xlane.f32.xlu1 %v57_v11  ;;  %v23_v11 = vld [vmem:[%s5288_s1] sm:$0x3]  ;;  %s4549_s1 = smov 64  }
  0x99   :  { %v56_v12 = vmul.f32 %v54_v10, %v54_v10 }
  0x9b   :  { %v60_v13 = vsel %vm43_vm0, %v56_v12, 0.0  ;;  %v3826_v12 = vadd.f32 -1.0, %v23_v11 }
  0x9c   :  { %61 = vadd.xlane.f32.xlu1 %v60_v13 }
  0x9d   :  { %v25_v13 = vmul.f32 1e+09, %v3826_v12 }
  0x9f   :  { %v4737_v18 = vrot.slane %v25_v13, %v4636_v39 }
 0x125   :  { %v59_v21 = vpop.xlane.xlu1 %58 }
 0x126   :  { %v63_v22 = vmul.f32 0.032258064, %v59_v21 }
 0x128   :  { %4412 = vrsqrt.f32 %v63_v22  ;;  %vm67_vm1 = vcmp.eq.f32.partialorder %v63_v22, inf  ;;  %v70_v27 = vand.u32 2147483648, %v63_v22  ;;  %vm69_vm2 = vcmp.eq.f32.partialorder %v63_v22, 0.0 }
 0x129   :  { %v62_v23 = vpop.xlane.xlu1 %61 }
 0x12a   :  { %v64_v24 = vmul.f32 0.032258064, %v62_v23 }
 0x12c   :  { %4414 = vrsqrt.f32 %v64_v24  ;;  %vm74_vm3 = vcmp.eq.f32.partialorder %v64_v24, inf  ;;  %v77_v34 = vand.u32 2147483648, %v64_v24  ;;  %vm76_vm4 = vcmp.eq.f32.partialorder %v64_v24, 0.0 }
 0x132   :  { %v4413_v25 = vpop.eup %4412 }
 0x133   :  { %v66_v26 = vmul.f32 %v4413_v25, %v63_v22 }
 0x135   :  { %v68_v29 = vsel %vm67_vm1, %v63_v22, %v66_v26 }
 0x136   :  { %v4415_v30 = vpop.eup %4414  ;;  %v71_v31 = vsel %vm69_vm2, %v70_v27, %v68_v29 }
 0x137   :  { %v73_v32 = vmul.f32 %v4415_v30, %v64_v24  ;;  %v79_v33 = vadd.f32 1e-06, %v71_v31 }
 0x139   :  { %v75_v36 = vsel %vm74_vm3, %v64_v24, %v73_v32  ;;  %4416 = vrcp.f32 %v79_v33 }
 0x13a   :  { %v78_v37 = vsel %vm76_vm4, %v77_v34, %v75_v36 }
 0x13b   :  { %v80_v38 = vadd.f32 1e-06, %v78_v37 }
 0x13d   :  { %4418 = vrcp.f32 %v80_v38 }
 0x143   :  { %v4417_v43 = vpop.eup %4416 }
 0x144   :  { %v87_v44 = vmul.f32 %v4417_v43, %v86_v41 }
 0x146   :  { %v89_v46 = vmul.f32 %v87_v44, %v53_v6 }
 0x147   :  { %v4419_v47 = vpop.eup %4418 }
 0x148   :  { %v88_v48 = vmul.f32 %v4419_v47, %v86_v41  ;;  %v95_v49 = vadd.f32 %v94_v45, %v89_v46  ;;  %v4749_v41 = vrot.slane %v25_v13, %v4646_v42 }
 0x14a   :  { %v90_v50 = vmul.f32 %v88_v48, %v54_v10  ;;  %4037 = vmatprep.mubr.msk.f32.mxu1 %vm43_vm0, %v95_v49 }
 0x14c   :  { %v96_v51 = vadd.f32 %v94_v45, %v90_v50 }
 0x14e   :  { %4038 = vmatmul.mubr.msk.f32.vlgmr.msra.gmra.mrb[0].mxu1 %vm43_vm0, %v96_v51 }
 0x14f   :  { %4042 = vmatprep.mubr.msk.f32.mxu1 %vm4541_vm5, %v4540_v52 }
 0x221   :  { %v4039_v55 = vpop.f32.mrb[0].mxu1 }
 0x222   :  { %v173_v56 = vpop.f32.mrb[1].mxu1  ;;  %v4676_v58 = vadd.f32 %v4039_v55, %v100_v54 }
 0x223   :  { %v4662_v57 = vadd.f32 %v173_v56, %v100_v54 }
 0x225   :  { %356 = vrot.lane.b32.xlu1 %v4662_v57, %s4542_s6  ;;  %183 = vrot.lane.b32.xlu0 %v4662_v57, %s4543_s7 }
 0x229   :  { %354 = vrot.lane.b32.xlu1 %v4662_v57, %s4544_s8  ;;  %527 = vrot.lane.b32.xlu0 %v4662_v57, %s4545_s9 }
 0x22d   :  { %529 = vrot.lane.b32.xlu1 %v4662_v57, %s4546_s10  ;;  %700 = vrot.lane.b32.xlu0 %v4662_v57, %s4547_s11 }
 0x231   :  { %702 = vrot.lane.b32.xlu1 %v4662_v57, %s4548_s12  ;;  %1046 = vrot.lane.b32.xlu0 %v4676_v58, %s4542_s6 }
 0x235   :  { %874 = vrot.lane.b32.xlu1 %v4676_v58, %s4543_s7  ;;  %1218 = vrot.lane.b32.xlu0 %v4676_v58, %s4546_s10 }
 0x239   :  { %1044 = vrot.lane.b32.xlu1 %v4676_v58, %s4544_s8  ;;  %1390 = vrot.lane.b32.xlu0 %v4676_v58, %s4548_s12 }
 0x23d   :  { %1216 = vrot.lane.b32.xlu1 %v4676_v58, %s4545_s9 }
 0x241   :  { %1388 = vrot.lane.b32.xlu1 %v4676_v58, %s4547_s11 }
 0x297   :  { %v357_v59 = vpop.permute.xlu1 %356  ;;  %v184_v60 = vpop.permute.xlu0 %183 }
 0x298   :  { %4041 = vmatpush3.xpose.msk.msra.mxu1 %vm185_vm6, %v184_v60  ;;  %4051 = vmatpush3.xpose.msk.msra.mxu0 %vm185_vm6, %v357_v59 }
 0x299   :  { %4060 = vmatprep.subr.mxu0 %v4540_v52  ;;  %4045 = vmatprep.subr.mxu1 %v4540_v52 }
 0x29b   :  { %v355_v61 = vpop.permute.xlu1 %354  ;;  %4043 = vmatmul.mubr.msk.f32.vlgmr.msra.gmra.mrb[2].mxu1 %vm185_vm6, %v4662_v57  ;;  %v528_v62 = vpop.permute.xlu0 %527 }
 0x29c   :  { %4053 = vmatmul.mubr.msk.f32.vlgmr.msra.gmra.mrb[0].mxu0 %vm185_vm6, %v355_v61  ;;  %4047 = vmatprep.mubr.msk.f32.mxu1 %vm4541_vm5, %v4540_v52 }
 0x29d   :  { %4062 = vmatprep.mubr.msk.f32.mxu0 %vm4541_vm5, %v4540_v52 }
 0x29f   :  { %v530_v63 = vpop.permute.xlu1 %529  ;;  %v701_v2 = vpop.permute.xlu0 %700 }
 0x2a0   :  { %4061 = vmatpush3.xpose.msk.msra.mxu0 %vm185_vm6, %v530_v63 }
 0x2a1   :  { %4070 = vmatprep.subr.mxu0 %v4540_v52 }
 0x2a3   :  { %v703_v3 = vpop.permute.xlu1 %702  ;;  %4063 = vmatmul.mubr.msk.f32.vlgmr.msra.gmra.mrb[2].mxu0 %vm185_vm6, %v528_v62  ;;  %v1047_v4 = vpop.permute.xlu0 %1046 }
 0x2a4   :  { %4071 = vmatpush3.xpose.msk.msra.mxu0 %vm185_vm6, %v703_v3  ;;  %4072 = vmatprep.mubr.msk.f32.mxu0 %vm4541_vm5, %v4540_v52 }
 0x2a5   :  { %4080 = vmatprep.subr.mxu0 %v4540_v52 }
 0x2a7   :  { %v875_v5 = vpop.permute.xlu1 %874  ;;  %4073 = vmatmul.mubr.msk.f32.vlgmr.msra.gmra.mrb[4].mxu0 %vm185_vm6, %v701_v2  ;;  %v1219_v7 = vpop.permute.xlu0 %1218 }
 0x2a8   :  { %4081 = vmatpush3.xpose.msk.msra.mxu0 %vm185_vm6, %v875_v5  ;;  %4082 = vmatprep.mubr.msk.f32.mxu0 %vm4541_vm5, %v4540_v52 }
 0x2a9   :  { %4090 = vmatprep.subr.mxu0 %v4540_v52 }
 0x2ab   :  { %v1045_v6 = vpop.permute.xlu1 %1044  ;;  %4083 = vmatmul.mubr.msk.f32.vlgmr.msra.gmra.mrb[6].mxu0 %vm185_vm6, %v4676_v58  ;;  %v1391_v9 = vpop.permute.xlu0 %1390 }
 0x2ac   :  { %4091 = vmatpush3.xpose.msk.msra.mxu0 %vm185_vm6, %v1047_v4  ;;  %4092 = vmatprep.mubr.msk.f32.mxu0 %vm4541_vm5, %v4540_v52 }
 0x2ad   :  { %4100 = vmatprep.subr.mxu0 %v4540_v52 }
 0x2af   :  { %4093 = vmatmul.mubr.msk.f32.vlgmr.msra.gmra.mrb[8].mxu0 %vm185_vm6, %v1045_v6  ;;  %v1217_v8 = vpop.permute.xlu1 %1216 }
 0x2b0   :  { %4101 = vmatpush3.xpose.msk.msra.mxu0 %vm185_vm6, %v1219_v7  ;;  %4102 = vmatprep.mubr.msk.f32.mxu0 %vm4541_vm5, %v4540_v52 }
 0x2b1   :  { %4110 = vmatprep.subr.mxu0 %v4540_v52 }
 0x2b3   :  { %4103 = vmatmul.mubr.msk.f32.vlgmr.msra.gmra.mrb[10].mxu0 %vm185_vm6, %v1217_v8  ;;  %v1389_v10 = vpop.permute.xlu1 %1388 }
 0x2b4   :  { %4111 = vmatpush3.xpose.msk.msra.mxu0 %vm185_vm6, %v1391_v9  ;;  %4112 = vmatprep.mubr.msk.f32.mxu0 %vm4541_vm5, %v4540_v52 }
 0x2b7   :  { %4113 = vmatmul.mubr.msk.f32.vlgmr.msra.gmra.mrb[12].mxu0 %vm185_vm6, %v1389_v10 }
 0x36e   :  { %v256_v20 = vpop.f32.mrb[2].mxu1 }
 0x36f   :  { %v260_v21 = vmul.f32 0.35355338, %v256_v20  ;;  %v4044_v22 = vpop.f32.mrb[3].mxu1  ;;  %v428_v23 = vpop.f32.mrb[0].mxu0 }
 0x370   :  { %v432_v24 = vmul.f32 0.35355338, %v428_v23  ;;  %v4054_v25 = vpop.f32.mrb[1].mxu0 }
 0x371   :  { %v265_v26 = vadd.f32 %v4737_v18, %v260_v21 }
 0x372   :  { %v433_v27 = vadd.f32 %v432_v24, %v4737_v18 }
 0x373   :  { %v266_v28 = vsel %vm185_vm6, %v265_v26, -inf }
 0x374   :  { %267 = vmax.xlane.f32.xlu0 %v266_v28  ;;  %v434_v29 = vsel %vm185_vm6, %v433_v27, -inf }
 0x375   :  { %435 = vmax.xlane.f32.xlu1 %v434_v29 }
 0x376   :  { %v601_v30 = vpop.f32.mrb[2].mxu0 }
 0x377   :  { %v605_v31 = vmul.f32 0.35355338, %v601_v30  ;;  %v4064_v32 = vpop.f32.mrb[3].mxu0 }
 0x379   :  { %v4744_v33 = vadd.f32 %v605_v31, %v4737_v18 }
 0x37a   :  { %v774_v34 = vpop.f32.mrb[4].mxu0 }
 0x37b   :  { %v778_v36 = vmul.f32 0.35355338, %v774_v34  ;;  %v4074_v37 = vpop.f32.mrb[5].mxu0  ;;  %v607_v38 = vsel %vm185_vm6, %v4744_v33, -inf }
 0x37c   :  { %608 = vmax.xlane.f32.xlu0 %v607_v38 }
 0x37d   :  { %v779_v43 = vadd.f32 %v778_v36, %v4737_v18 }
 0x37e   :  { %v946_v44 = vpop.f32.mrb[6].mxu0 }
 0x37f   :  { %v950_v45 = vmul.f32 0.35355338, %v946_v44  ;;  %v4084_v46 = vpop.f32.mrb[7].mxu0  ;;  %v780_v47 = vsel %vm185_vm6, %v779_v43, -inf }
 0x380   :  { %781 = vmax.xlane.f32.xlu0 %v780_v47 }
 0x381   :  { %v4754_v48 = vadd.f32 %v4749_v41, %v950_v45 }
 0x382   :  { %v1118_v49 = vpop.f32.mrb[8].mxu0 }
 0x383   :  { %v1122_v50 = vmul.f32 0.35355338, %v1118_v49  ;;  %v4094_v51 = vpop.f32.mrb[9].mxu0  ;;  %v956_v54 = vsel %vm185_vm6, %v4754_v48, -inf }
 0x384   :  { %957 = vmax.xlane.f32.xlu0 %v956_v54 }
 0x385   :  { %v1123_v55 = vadd.f32 %v1122_v50, %v4749_v41 }
 0x386   :  { %v1290_v56 = vpop.f32.mrb[10].mxu0 }
 0x387   :  { %v1294_v59 = vmul.f32 0.35355338, %v1290_v56  ;;  %v4104_v60 = vpop.f32.mrb[11].mxu0  ;;  %v1124_v61 = vsel %vm185_vm6, %v1123_v55, -inf }
 0x388   :  { %1125 = vmax.xlane.f32.xlu1 %v1124_v61 }
 0x389   :  { %v1295_v62 = vadd.f32 %v1294_v59, %v4749_v41 }
 0x38a   :  { %v1462_v63 = vpop.f32.mrb[12].mxu0 }
 0x38b   :  { %v4114_v2 = vpop.f32.mrb[13].mxu0  ;;  %v1296_v3 = vsel %vm185_vm6, %v1295_v62, -inf  ;;  %v1466_v4 = vmul.f32 0.35355338, %v1462_v63 }
 0x38c   :  { %1297 = vmax.xlane.f32.xlu0 %v1296_v3 }
 0x38d   :  { %v1467_v5 = vadd.f32 %v1466_v4, %v4749_v41 }
 0x38f   :  { %v1468_v6 = vsel %vm185_vm6, %v1467_v5, -inf }
 0x399   :  { %277 = vrot.lane.b32.xlu1 %v4662_v57, %s4549_s1 }
 0x3bd   :  { %1469 = vmax.xlane.f32.xlu1 %v1468_v6 }
 0x3ce   :  { %618 = vrot.lane.b32.xlu1 %v4662_v57, %s4550_s15 }
 0x3d2   :  { %791 = vrot.lane.b32.xlu1 %v4662_v57, %s4551_s16 }
 0x3d6   :  { %967 = vrot.lane.b32.xlu1 %v4676_v58, %s4549_s1 }
 0x401   :  { %v268_v7 = vpop.xlane.xlu0 %267 }
 0x402   :  { %v269_v8 = vsub.f32 %v265_v26, %v268_v7  ;;  %v436_v9 = vpop.xlane.xlu1 %435 }
 0x403   :  { %v437_v10 = vsub.f32 %v433_v27, %v436_v9 }
 0x404   :  { %v270_v11 = vmul.f32 1.442695, %v269_v8 }
 0x405   :  { %v438_v12 = vmul.f32 1.442695, %v437_v10 }
 0x406   :  { %4420 = vpow2.f32 %v270_v11 }
 0x407   :  { %4422 = vpow2.f32 %v438_v12 }
 0x409   :  { %v609_v13 = vpop.xlane.xlu0 %608 }
 0x40a   :  { %v610_v31 = vsub.f32 %v4744_v33, %v609_v13 }
 0x40c   :  { %v611_v34 = vmul.f32 1.442695, %v610_v31 }
 0x40d   :  { %v782_v20 = vpop.xlane.xlu0 %781 }
 0x40e   :  { %v783_v21 = vsub.f32 %v779_v43, %v782_v20 }
 0x410   :  { %v4421_v22 = vpop.eup %4420  ;;  %v784_v23 = vmul.f32 1.442695, %v783_v21 }
 0x411   :  { %v4772_v24 = vpop.eup %4422  ;;  %v272_v25 = vsel %vm185_vm6, %v4421_v22, 0.0  ;;  %v958_v32 = vpop.xlane.xlu0 %957 }
 0x412   :  { %4424 = vpow2.f32 %v784_v23  ;;  %273 = vadd.xlane.f32.xlu0 %v272_v25  ;;  %v440_v26 = vsel %vm185_vm6, %v4772_v24, 0.0  ;;  %v959_v36 = vsub.f32 %v4754_v48, %v958_v32 }
 0x413   :  { %441 = vadd.xlane.f32.xlu1 %v440_v26  ;;  %4426 = vpow2.f32 %v611_v34 }
 0x414   :  { %v960_v38 = vmul.f32 1.442695, %v959_v36 }
 0x415   :  { %v1126_v27 = vpop.xlane.xlu1 %1125 }
 0x416   :  { %4428 = vpow2.f32 %v960_v38  ;;  %v1127_v44 = vsub.f32 %v1123_v55, %v1126_v27 }
 0x418   :  { %v1128_v46 = vmul.f32 1.442695, %v1127_v44 }
 0x419   :  { %v278_v28 = vpop.permute.xlu1 %277  ;;  %v1298_v37 = vpop.xlane.xlu0 %1297 }
 0x41a   :  { %4046 = vmatpush3.msra.mxu1 %v278_v28  ;;  %v1299_v43 = vsub.f32 %v1295_v62, %v1298_v37 }
 0x41b   :  { %4055 = vmatprep.subr.mxu1 %v4540_v52 }
 0x41c   :  { %v4778_v29 = vpop.eup %4424  ;;  %v1300_v45 = vmul.f32 1.442695, %v1299_v43 }
 0x41d   :  { %v786_v30 = vsel %vm185_vm6, %v4778_v29, 0.0  ;;  %v4427_v47 = vpop.eup %4426 }
 0x41e   :  { %787 = vadd.xlane.f32.xlu1 %v786_v30  ;;  %4430 = vpow2.f32 %v1300_v45 }
 0x41f   :  { %4432 = vpow2.f32 %v1128_v46 }
 0x420   :  { %v4429_v49 = vpop.eup %4428 }
 0x421   :  { %v962_v50 = vsel %vm185_vm6, %v4429_v49, 0.0 }
 0x428   :  { %445 = vrot.lane.b32.xlu0 %v4662_v57, %s4552_s17  ;;  %v613_v57 = vsel %vm185_vm6, %v4427_v47, 0.0  ;;  %v4790_v51 = vpop.eup %4430 }
 0x429   :  { %v1302_v55 = vsel %vm185_vm6, %v4790_v51, 0.0  ;;  %v4433_v56 = vpop.eup %4432 }
 0x42a   :  { %v1130_v59 = vsel %vm185_vm6, %v4433_v56, 0.0 }
 0x42f   :  { %1135 = vrot.lane.b32.xlu1 %v4676_v58, %s4552_s17 }
 0x447   :  { %614 = vadd.xlane.f32.xlu0 %v613_v57 }
 0x44a   :  { %v1470_v33 = vpop.xlane.xlu1 %1469 }
 0x44b   :  { %v1471_v48 = vsub.f32 %v1467_v5, %v1470_v33  ;;  %963 = vadd.xlane.f32.xlu0 %v962_v50 }
 0x44d   :  { %v1472_v54 = vmul.f32 1.442695, %v1471_v48 }
 0x44e   :  { %v619_v62 = vpop.permute.xlu1 %618 }
 0x44f   :  { %4434 = vpow2.f32 %v1472_v54  ;;  %1303 = vadd.xlane.f32.xlu0 %v1302_v55 }
 0x452   :  { %v792_v63 = vpop.permute.xlu1 %791 }
 0x453   :  { %1131 = vadd.xlane.f32.xlu1 %v1130_v59  ;;  %v4397_v59 = vpack.i.bf16 %v4629_v19, %v4620_v16 }
 0x456   :  { %v968_v2 = vpop.permute.xlu1 %967 }
 0x459   :  { %v4795_v60 = vpop.eup %4434 }
 0x45a   :  { %v1474_v61 = vsel %vm185_vm6, %v4795_v60, 0.0 }
 0x45b   :  { %1475 = vadd.xlane.f32.xlu0 %v1474_v61 }
 0x464   :  { %1479 = vrot.lane.b32.xlu1 %v4676_v58, %s4551_s16 }
 0x468   :  { %4393 = vrot.lane.b32.xlu1 %v4392_v17, %s4553_s18 }
 0x471   :  { %1307 = vrot.lane.b32.xlu0 %v4676_v58, %s4550_s15 }
 0x49f   :  { %v274_v3 = vpop.xlane.xlu0 %273 }
 0x4a0   :  { %4436 = vrcp.f32 %v274_v3  ;;  %v442_v4 = vpop.xlane.xlu1 %441 }
 0x4a1   :  { %4438 = vrcp.f32 %v442_v4 }
 0x4a3   :  { %v446_v8 = vpop.permute.xlu0 %445 }
 0x4aa   :  { %v4437_v5 = vpop.eup %4436 }
 0x4ab   :  { %v276_v6 = vmul.f32 %v4437_v5, %v4421_v22  ;;  %v4439_v7 = vpop.eup %4438  ;;  %v788_v58 = vpop.xlane.xlu1 %787 }
 0x4ac   :  { %v444_v9 = vmul.f32 %v4439_v7, %v4772_v24 }
 0x4ad   :  { %4048 = vmatmul.mubr.msk.f32.vlgmr.msra.gmra.mrb[4].mxu1 %vm185_vm6, %v276_v6 }
 0x4ae   :  { %4056 = vmatpush3.msra.mxu1 %v446_v8  ;;  %4057 = vmatprep.mubr.msk.f32.mxu1 %vm4541_vm5, %v4540_v52 }
 0x4af   :  { %4065 = vmatprep.subr.mxu1 %v4540_v52  ;;  %v1136_v12 = vpop.permute.xlu1 %1135 }
 0x4b1   :  { %4058 = vmatmul.mubr.msk.f32.vlgmr.msra.gmra.mrb[6].mxu1 %vm185_vm6, %v444_v9 }
 0x4b2   :  { %4066 = vmatpush3.msra.mxu1 %v619_v62  ;;  %4067 = vmatprep.mubr.msk.f32.mxu1 %vm4541_vm5, %v4540_v52 }
 0x4b3   :  { %4075 = vmatprep.subr.mxu1 %v4540_v52 }
 0x4d4   :  { %v615_v10 = vpop.xlane.xlu0 %614 }
 0x4d5   :  { %4440 = vrcp.f32 %v615_v10 }
 0x4d6   :  { %4442 = vrcp.f32 %v788_v58  ;;  %v1663_v58 = vsub.s32 3, %v4633_v35 }
 0x4d8   :  { %v964_v11 = vpop.xlane.xlu0 %963  ;;  %v1664_v10 = vrot.slane %v4641_v40, %v1663_v58 }
 0x4d9   :  { %4444 = vrcp.f32 %v964_v11 }
 0x4dc   :  { %v1304_v21 = vpop.xlane.xlu0 %1303 }
 0x4df   :  { %v4441_v13 = vpop.eup %4440 }
 0x4e0   :  { %v617_v20 = vmul.f32 %v4441_v13, %v4427_v47  ;;  %v1132_v22 = vpop.xlane.xlu1 %1131  ;;  %v4443_v23 = vpop.eup %4442 }
 0x4e1   :  { %4446 = vrcp.f32 %v1132_v22  ;;  %v790_v24 = vmul.f32 %v4443_v23, %v4778_v29 }
 0x4e2   :  { %4068 = vmatmul.mubr.msk.f32.vlgmr.msra.gmra.mrb[8].mxu1 %vm185_vm6, %v617_v20  ;;  %4448 = vrcp.f32 %v1304_v21 }
 0x4e3   :  { %4076 = vmatpush3.msra.mxu1 %v792_v63  ;;  %4077 = vmatprep.mubr.msk.f32.mxu1 %vm4541_vm5, %v4540_v52  ;;  %v4445_v25 = vpop.eup %4444 }
 0x4e4   :  { %4085 = vmatprep.subr.mxu1 %v4540_v52  ;;  %v966_v26 = vmul.f32 %v4445_v25, %v4429_v49  ;;  %v1480_v34 = vpop.permute.xlu1 %1479 }
 0x4e6   :  { %4078 = vmatmul.mubr.msk.f32.vlgmr.msra.gmra.mrb[10].mxu1 %vm185_vm6, %v790_v24 }
 0x4e7   :  { %4086 = vmatpush3.msra.mxu1 %v968_v2  ;;  %4087 = vmatprep.mubr.msk.f32.mxu1 %vm4541_vm5, %v4540_v52 }
 0x4e8   :  { %v1476_v27 = vpop.xlane.xlu0 %1475  ;;  %4095 = vmatprep.subr.mxu1 %v4540_v52  ;;  %v4394_v38 = vpop.permute.xlu1 %4393 }
 0x4e9   :  { %4450 = vrcp.f32 %v1476_v27  ;;  %v4396_v43 = vunpack.i.h.bf16 %v4394_v38  ;;  %v4395_v44 = vunpack.i.l.bf16 %v4394_v38 }
 0x4ea   :  { %4088 = vmatmul.mubr.msk.f32.vlgmr.msra.gmra.mrb[12].mxu1 %vm185_vm6, %v966_v26 }
 0x4eb   :  { %v4447_v28 = vpop.eup %4446  ;;  %4096 = vmatpush3.msra.mxu1 %v1136_v12  ;;  %4097 = vmatprep.mubr.msk.f32.mxu1 %vm4541_vm5, %v4540_v52  ;;  %v4301_v45 = vpack.c.bf16 %v4396_v43, %v4395_v44  ;;  %v34_v43 = vld [vmem:[%s5289_s2 + $0x38] sm:$0xff] }
 0x4ec   :  { %v1134_v29 = vmul.f32 %v4447_v28, %v4433_v56  ;;  %v1308_v30 = vpop.permute.xlu0 %1307  ;;  %4105 = vmatprep.subr.mxu1 %v4540_v52  ;;  %v4449_v31 = vpop.eup %4448 }
 0x4ed   :  { %v1306_v32 = vmul.f32 %v4449_v31, %v4790_v51  ;;  %4302 = vmatprep.subr.bf16.mxu0 %v4301_v45 }
 0x4ee   :  { %4098 = vmatmul.mubr.msk.f32.vlgmr.msra.gmra.mrb[14].mxu1 %vm185_vm6, %v1134_v29  ;;  %4304 = vmatpush3.bf16.msra.mxu0 %v4301_v45  ;;  %v35_v45 = vld [vmem:[%s5290_s3] sm:$0xff] }
 0x4ef   :  { %4106 = vmatpush3.msra.mxu1 %v1308_v30  ;;  %4107 = vmatprep.mubr.msk.f32.mxu1 %vm4541_vm5, %v4540_v52 }
 0x4f0   :  { %4115 = vmatprep.subr.mxu1 %v4540_v52 }
 0x4f2   :  { %4108 = vmatmul.mubr.msk.f32.vlgmr.msra.gmra.mrb[16].mxu1 %vm185_vm6, %v1306_v32 }
 0x4f3   :  { %v4451_v36 = vpop.eup %4450  ;;  %4116 = vmatpush3.msra.mxu1 %v1480_v34  ;;  %4117 = vmatprep.mubr.msk.f32.mxu1 %vm4541_vm5, %v4540_v52  ;;  %v31_v34 = vld [vmem:[%s5289_s2 + $0x8] sm:$0xff] }
 0x4f4   :  { %v1478_v37 = vmul.f32 %v4451_v36, %v4795_v60  ;;  %v32_v36 = vld [vmem:[%s5289_s2 + $0x18] sm:$0xff] }
 0x4f5   :  { %v4309_v38 = vpack.c.bf16 %v32_v36, %v31_v34  ;;  %v1892_v36 = vsub.s32 7, %v4633_v35 }
 0x4f6   :  { %4118 = vmatmul.mubr.msk.f32.vlgmr.msra.gmra.mrb[18].mxu1 %vm185_vm6, %v1478_v37  ;;  %v33_v37 = vld [vmem:[%s5289_s2 + $0x28] sm:$0xff] }
 0x4f7   :  { %v4313_v44 = vpack.c.bf16 %v34_v43, %v33_v37  ;;  %4310 = vmatprep.subr.bf16.mxu1 %v4309_v38  ;;  %v1893_v37 = vrot.slane %v4641_v40, %v1892_v36 }
 0x4f8   :  { %4312 = vmatpush3.bf16.msra.mxu1 %v4309_v38 }
 0x4f9   :  { %4314 = vmatprep.subr.bf16.mxu1 %v4313_v44 }
 0x4fc   :  { %4316 = vmatpush3.bf16.msra.mxu1 %v4313_v44 }
 0x580   :  { %v349_v46 = vpop.f32.mrb[4].mxu1 }
 0x581   :  { %353 = vst.msk [vmem:[#allocation2] sm:$0xff] %vm185_vm6, %v349_v46  ;;  %v4049_v47 = vpop.f32.mrb[5].mxu1  ;;  %v36_v46 = vld [vmem:[%s5290_s3 + $0x8] sm:$0xff] }
 0x582   :  { %v37_v47 = vld [vmem:[%s5290_s3 + $0x10] sm:$0xff] }
 0x584   :  { %v517_v57 = vpop.f32.mrb[6].mxu1 }
 0x585   :  { %522 = vrot.lane.b32.xlu0 %v517_v57, %s4554_s19  ;;  %v4059_v49 = vpop.f32.mrb[7].mxu1  ;;  %v4317_v57 = vpack.c.bf16 %v36_v46, %v35_v45 }
 0x586   :  { %v38_v49 = vld [vmem:[%s5290_s3 + $0x18] sm:$0xff] }
 0x5b5   :  { %v690_v33 = vpop.f32.mrb[8].mxu1 }
 0x5b6   :  { %695 = vrot.lane.b32.xlu1 %v690_v33, %s4555_s20  ;;  %v4069_v14 = vpop.f32.mrb[9].mxu1  ;;  %v4321_v33 = vpack.c.bf16 %v38_v49, %v37_v47 }
 0x5b7   :  { %v39_v14 = vld [vmem:[%s5290_s3 + $0x20] sm:$0xff] }
 0x5b9   :  { %v863_v15 = vpop.f32.mrb[10].mxu1 }
 0x5ba   :  { %868 = vrot.lane.b32.xlu0 %v863_v15, %s4556_s21  ;;  %v4079_v17 = vpop.f32.mrb[11].mxu1  ;;  %v40_v15 = vld [vmem:[%s5290_s3 + $0x28] sm:$0xff] }
 0x5bb   :  { %v4325_v17 = vpack.c.bf16 %v40_v15, %v39_v14 }
 0x5bd   :  { %v1039_v50 = vpop.f32.mrb[12].mxu1 }
 0x5be   :  { %1043 = vst.msk [vmem:[#allocation2 + $0x8] sm:$0xff] %vm185_vm6, %v1039_v50  ;;  %v4089_v51 = vpop.f32.mrb[13].mxu1 }
 0x5c1   :  { %v1207_v48 = vpop.f32.mrb[14].mxu1 }
 0x5c2   :  { %1212 = vrot.lane.b32.xlu0 %v1207_v48, %s4554_s19  ;;  %v4099_v54 = vpop.f32.mrb[15].mxu1 }
 0x5c5   :  { %v1379_v55 = vpop.f32.mrb[16].mxu1 }
 0x5c6   :  { %1384 = vrot.lane.b32.xlu1 %v1379_v55, %s4555_s20  ;;  %v4109_v56 = vpop.f32.mrb[17].mxu1 }
 0x5c9   :  { %v1551_v60 = vpop.f32.mrb[18].mxu1 }
 0x5ca   :  { %4398 = vrot.lane.b32.xlu1 %v4397_v59, %s4553_s18  ;;  %1556 = vrot.lane.b32.xlu0 %v1551_v60, %s4556_s21  ;;  %v4119_v61 = vpop.f32.mrb[19].mxu1 }
 0x5f7   :  { %v523_v62 = vpop.permute.xlu0 %522 }
 0x5f8   :  { %526 = vst.msk [vmem:[#allocation2] sm:$0xff] %vm525_vm7, %v523_v62 }
 0x628   :  { %v696_v63 = vpop.permute.xlu1 %695 }
 0x629   :  { %699 = vst.msk [vmem:[#allocation2] sm:$0xff] %vm698_vm8, %v696_v63 }
 0x62c   :  { %v869_v2 = vpop.permute.xlu0 %868 }
 0x62d   :  { %872 = vst.msk [vmem:[#allocation2] sm:$0xff] %vm871_vm9, %v869_v2 }
 0x634   :  { %v1213_v3 = vpop.permute.xlu0 %1212  ;;  %v1560_v16 = vld [vmem:[#allocation2] sm:$0xff] }
 0x635   :  { %1215 = vst.msk [vmem:[#allocation2 + $0x8] sm:$0xff] %vm525_vm7, %v1213_v3  ;;  %4128 = vmatprep.mubr.msk.f32.mxu0 %vm43_vm0, %v1560_v16 }
 0x638   :  { %v1385_v19 = vpop.permute.xlu1 %1384 }
 0x639   :  { %1387 = vst.msk [vmem:[#allocation2 + $0x8] sm:$0xff] %vm698_vm8, %v1385_v19 }
 0x63c   :  { %v4399_v4 = vpop.permute.xlu1 %4398  ;;  %v1557_v5 = vpop.permute.xlu0 %1556 }
 0x63d   :  { %v4401_v6 = vunpack.i.h.bf16 %v4399_v4  ;;  %v4400_v7 = vunpack.i.l.bf16 %v4399_v4  ;;  %1559 = vst.msk [vmem:[#allocation2 + $0x8] sm:$0xff] %vm871_vm9, %v1557_v5  ;;  %v1707_v5 = vsub.s32 4, %v4633_v35 }
 0x63f   :  { %v4305_v8 = vpack.c.bf16 %v4401_v6, %v4400_v7  ;;  %v1708_v6 = vrot.slane %v4641_v40, %v1707_v5  ;;  %v1715_v7 = vsub.s32 5, %v4633_v35 }
 0x641   :  { %4306 = vmatprep.subr.bf16.mxu0 %v4305_v8 }
 0x642   :  { %4308 = vmatpush3.bf16.msra.mxu0 %v4305_v8 }
 0x643   :  { %4318 = vmatprep.subr.bf16.mxu0 %v4317_v57 }
 0x644   :  { %v1561_v9 = vld [vmem:[#allocation2 + $0x8] sm:$0xff] }
 0x645   :  { %4129 = vmatmul.mubr.msk.f32.vlgmr.msra.gmra.mrb[14].mxu0 %vm43_vm0, %v1561_v9 }
 0x646   :  { %4320 = vmatpush3.bf16.msra.mxu0 %v4317_v57 }
 0x647   :  { %4322 = vmatprep.subr.bf16.mxu0 %v4321_v33 }
 0x64a   :  { %4324 = vmatpush3.bf16.msra.mxu0 %v4321_v33 }
 0x64b   :  { %4326 = vmatprep.subr.bf16.mxu0 %v4325_v17 }
 0x64e   :  { %4328 = vmatpush3.bf16.msra.mxu0 %v4325_v17 }
 0x718   :  { %v4130_v11 = vpop.f32.mrb[14].mxu0 }
 0x719   :  { %v1660_v12 = vadd.f32 %v4130_v11, %v4597_v1  ;;  %v1650_v13 = vpop.f32.mrb[15].mxu0 }
 0x71a   :  { %v1659_v20 = vadd.f32 %v1650_v13, %v4592_v0 }
 0x71b   :  { %v4864_v21 = vadd.f32 %v1664_v10, %v1660_v12 }
 0x71c   :  { %v4866_v22 = vadd.f32 %v1664_v10, %v1659_v20  ;;  %v1716_v10 = vrot.slane %v4641_v40, %v1715_v7 }
 0x71d   :  { %v1670_v23 = vsel %vm43_vm0, %v4864_v21, 0.0 }
 0x71e   :  { %1671 = vadd.xlane.f32.xlu1 %v1670_v23  ;;  %v1667_v24 = vsel %vm43_vm0, %v4866_v22, 0.0 }
 0x71f   :  { %1668 = vadd.xlane.f32.xlu0 %v1667_v24 }
 0x7ab   :  { %v1672_v25 = vpop.xlane.xlu1 %1671 }
 0x7ac   :  { %v1674_v26 = vmul.f32 0.03125, %v1672_v25  ;;  %v1669_v27 = vpop.xlane.xlu0 %1668  ;;  %v41_v25 = vld [vmem:[%s5290_s3 + $0x30] sm:$0xff] }
 0x7ad   :  { %v1673_v28 = vmul.f32 0.03125, %v1669_v27 }
 0x7ae   :  { %v4873_v1 = vsub.f32 %v4864_v21, %v1674_v26  ;;  %v42_v26 = vld [vmem:[%s5290_s3 + $0x38] sm:$0xff] }
 0x7af   :  { %v1675_v0 = vsub.f32 %v4866_v22, %v1673_v28  ;;  %v4329_v27 = vpack.c.bf16 %v42_v26, %v41_v25  ;;  %v1721_v28 = vsub.s32 6, %v4633_v35  ;;  %v4986_v26 = vld [vmem:[%s5291_s4 + $0x8] sm:$0xff] }
 0x7b0   :  { %v1678_v31 = vmul.f32 %v4873_v1, %v4873_v1 }
 0x7b1   :  { %v1677_v29 = vmul.f32 %v1675_v0, %v1675_v0  ;;  %4330 = vmatprep.subr.bf16.mxu0 %v4329_v27 }
 0x7b2   :  { %v1682_v32 = vsel %vm43_vm0, %v1678_v31, 0.0  ;;  %4332 = vmatpush3.bf16.msra.mxu0 %v4329_v27  ;;  %v1957_v27 = vrot.slane %v4986_v26, %v4636_v39 }
 0x7b3   :  { %v1679_v30 = vsel %vm43_vm0, %v1677_v29, 0.0  ;;  %4182 = vmatprep.subr.mxu0 %v4540_v52 }
 0x7b4   :  { %1680 = vadd.xlane.f32.xlu0 %v1679_v30 }
 0x7b8   :  { %1683 = vadd.xlane.f32.xlu0 %v1682_v32 }
 0x841   :  { %v1681_v50 = vpop.xlane.xlu0 %1680 }
 0x842   :  { %v1685_v51 = vmul.f32 0.032258064, %v1681_v50 }
 0x844   :  { %4452 = vrsqrt.f32 %v1685_v51  ;;  %vm1689_vm10 = vcmp.eq.f32.partialorder %v1685_v51, inf  ;;  %v1692_v59 = vand.u32 2147483648, %v1685_v51  ;;  %vm1691_vm11 = vcmp.eq.f32.partialorder %v1685_v51, 0.0 }
 0x845   :  { %v1684_v48 = vpop.xlane.xlu0 %1683 }
 0x846   :  { %v1686_v54 = vmul.f32 0.032258064, %v1684_v48 }
 0x848   :  { %4454 = vrsqrt.f32 %v1686_v54  ;;  %vm1696_vm12 = vcmp.eq.f32.partialorder %v1686_v54, inf  ;;  %v1699_v3 = vand.u32 2147483648, %v1686_v54  ;;  %vm1698_vm13 = vcmp.eq.f32.partialorder %v1686_v54, 0.0 }
 0x84e   :  { %v4453_v55 = vpop.eup %4452 }
 0x84f   :  { %v1688_v56 = vmul.f32 %v4453_v55, %v1685_v51  ;;  %v4962_v55 = vld [vmem:[%s5289_s2 + $0x50] sm:$0xff] }
 0x851   :  { %v1690_v60 = vsel %vm1689_vm10, %v1685_v51, %v1688_v56  ;;  %v4967_v56 = vld [vmem:[%s5289_s2 + $0x60] sm:$0xff] }
 0x852   :  { %v4455_v61 = vpop.eup %4454  ;;  %v1693_v62 = vsel %vm1691_vm11, %v1692_v59, %v1690_v60 }
 0x853   :  { %v1701_v63 = vadd.f32 1e-06, %v1693_v62  ;;  %v1695_v2 = vmul.f32 %v4455_v61, %v1686_v54  ;;  %v4976_v61 = vld [vmem:[%s5289_s2 + $0x70] sm:$0xff] }
 0x854   :  { %v4407_v62 = vpack.i.bf16 %v4976_v61, %v4967_v56 }
 0x855   :  { %4456 = vrcp.f32 %v1701_v63  ;;  %v1697_v16 = vsel %vm1696_vm12, %v1686_v54, %v1695_v2  ;;  %v4957_v54 = vld [vmem:[%s5289_s2 + $0x40] sm:$0xff]  ;;  %v4337_v63 = vpack.c.bf16 %v4976_v61, %v4967_v56 }
 0x856   :  { %v1700_v19 = vsel %vm1698_vm13, %v1699_v3, %v1697_v16  ;;  %v4402_v59 = vpack.i.bf16 %v4962_v55, %v4957_v54  ;;  %v4333_v60 = vpack.c.bf16 %v4962_v55, %v4957_v54 }
 0x857   :  { %v1702_v4 = vadd.f32 1e-06, %v1700_v19 }
 0x858   :  { %4334 = vmatprep.subr.bf16.mxu1 %v4333_v60 }
 0x859   :  { %4458 = vrcp.f32 %v1702_v4 }
 0x85f   :  { %v4457_v8 = vpop.eup %4456 }
 0x860   :  { %v1709_v9 = vmul.f32 %v4457_v8, %v1708_v6 }
 0x862   :  { %v1711_v11 = vmul.f32 %v1709_v9, %v1675_v0 }
 0x863   :  { %v4459_v12 = vpop.eup %4458 }
 0x864   :  { %v1710_v13 = vmul.f32 %v4459_v12, %v1708_v6  ;;  %v1717_v20 = vadd.f32 %v1716_v10, %v1711_v11 }
 0x866   :  { %v1712_v23 = vmul.f32 %v1710_v13, %v4873_v1  ;;  %4139 = vmatprep.mubr.msk.f32.mxu1 %vm43_vm0, %v1717_v20  ;;  %v1722_v1 = vrot.slane %v4641_v40, %v1721_v28 }
 0x868   :  { %v1718_v24 = vadd.f32 %v1716_v10, %v1712_v23 }
 0x86a   :  { %4140 = vmatmul.mubr.msk.f32.vlgmr.msra.gmra.mrb[20].mxu1 %vm43_vm0, %v1718_v24 }
 0x86b   :  { %4336 = vmatpush3.bf16.msra.mxu1 %v4333_v60 }
 0x86c   :  { %4338 = vmatprep.subr.bf16.mxu1 %v4337_v63 }
 0x86f   :  { %4340 = vmatpush3.bf16.msra.mxu1 %v4337_v63 }
 0x870   :  { %4172 = vmatprep.subr.mxu1 %v4540_v52 }
 0x93d   :  { %v4141_v0 = vpop.f32.mrb[20].mxu1 }
 0x93e   :  { %v1801_v29 = vadd.f32 %v4141_v0, %v1722_v1  ;;  %v1795_v30 = vpop.f32.mrb[21].mxu1 }
 0x93f   :  { %v1796_v31 = vadd.f32 %v1795_v30, %v1722_v1 }
 0x940   :  { %v1805_v34 = vmax.f32 %v1801_v29, 0.0 }
 0x941   :  { %v1804_v32 = vmax.f32 %v1796_v31, 0.0  ;;  %v1965_v31 = vrot.slane %v4986_v26, %v4646_v42 }
 0x943   :  { %4158 = vmatprep.mubr.msk.f32.mxu0 %vm1806_vm14, %v1804_v32 }
 0x944   :  { %4159 = vmatmul.mubr.msk.f32.vlgmr.msra.gmra.mrb[16].mxu0 %vm1806_vm14, %v1805_v34 }
 0x945   :  { %4184 = vmatprep.mubr.msk.f32.mxu0 %vm4541_vm5, %v4540_v52 }
 0xa17   :  { %v4160_v38 = vpop.f32.mrb[16].mxu0 }
 0xa18   :  { %v1889_v43 = vadd.f32 %v4160_v38, %v4864_v21  ;;  %v1879_v44 = vpop.f32.mrb[17].mxu0 }
 0xa19   :  { %v1888_v45 = vadd.f32 %v1879_v44, %v4866_v22 }
 0xa1a   :  { %v4942_v46 = vadd.f32 %v1893_v37, %v1889_v43  ;;  %v1971_v43 = vrot.slane %v4986_v26, %v99_v53 }
 0xa1b   :  { %v4944_v47 = vadd.f32 %v1893_v37, %v1888_v45 }
 0xa1c   :  { %v1919_v57 = vsel %vm43_vm0, %v4942_v46, 0.0 }
 0xa1d   :  { %1920 = vadd.xlane.f32.xlu1 %v1919_v57  ;;  %v1916_v49 = vsel %vm43_vm0, %v4944_v47, 0.0 }
 0xa1e   :  { %1917 = vadd.xlane.f32.xlu0 %v1916_v49 }
 0xaaa   :  { %v1921_v33 = vpop.xlane.xlu1 %1920 }
 0xaab   :  { %v1923_v40 = vmul.f32 0.03125, %v1921_v33  ;;  %v1918_v14 = vpop.xlane.xlu0 %1917 }
 0xaac   :  { %v1922_v15 = vmul.f32 0.03125, %v1918_v14 }
 0xaad   :  { %v1925_v21 = vsub.f32 %v4942_v46, %v1923_v40 }
 0xaae   :  { %v1924_v22 = vsub.f32 %v4944_v47, %v1922_v15 }
 0xaaf   :  { %v1927_v17 = vmul.f32 %v1925_v21, %v1925_v21 }
 0xab0   :  { %v1926_v50 = vmul.f32 %v1924_v22, %v1924_v22 }
 0xab1   :  { %v1931_v51 = vsel %vm43_vm0, %v1927_v17, 0.0 }
 0xab2   :  { %1932 = vadd.xlane.f32.xlu1 %v1931_v51  ;;  %v1928_v48 = vsel %vm43_vm0, %v1926_v50, 0.0 }
 0xab3   :  { %1929 = vadd.xlane.f32.xlu0 %v1928_v48 }
 0xb3f   :  { %v1933_v2 = vpop.xlane.xlu1 %1932 }
 0xb40   :  { %v1935_v3 = vmul.f32 0.032258064, %v1933_v2  ;;  %v1930_v16 = vpop.xlane.xlu0 %1929 }
 0xb41   :  { %v1934_v19 = vmul.f32 0.032258064, %v1930_v16 }
 0xb42   :  { %4460 = vrsqrt.f32 %v1935_v3  ;;  %vm1945_vm15 = vcmp.eq.f32.partialorder %v1935_v3, inf  ;;  %v1948_v9 = vand.u32 2147483648, %v1935_v3  ;;  %vm1947_vm1 = vcmp.eq.f32.partialorder %v1935_v3, 0.0 }
 0xb43   :  { %4462 = vrsqrt.f32 %v1934_v19  ;;  %vm1938_vm2 = vcmp.eq.f32.partialorder %v1934_v19, inf  ;;  %v1941_v12 = vand.u32 2147483648, %v1934_v19  ;;  %vm1940_vm3 = vcmp.eq.f32.partialorder %v1934_v19, 0.0 }
 0xb4c   :  { %v4461_v4 = vpop.eup %4460 }
 0xb4d   :  { %v4463_v6 = vpop.eup %4462  ;;  %v1944_v8 = vmul.f32 %v4461_v4, %v1935_v3 }
 0xb4e   :  { %v1937_v10 = vmul.f32 %v4463_v6, %v1934_v19 }
 0xb4f   :  { %v1946_v11 = vsel %vm1945_vm15, %v1935_v3, %v1944_v8 }
 0xb50   :  { %v1949_v13 = vsel %vm1947_vm1, %v1948_v9, %v1946_v11  ;;  %v1939_v20 = vsel %vm1938_vm2, %v1934_v19, %v1937_v10 }
 0xb51   :  { %v1951_v23 = vadd.f32 1e-06, %v1949_v13  ;;  %v1942_v24 = vsel %vm1940_vm3, %v1941_v12, %v1939_v20 }
 0xb52   :  { %v1950_v25 = vadd.f32 1e-06, %v1942_v24 }
 0xb53   :  { %4464 = vrcp.f32 %v1951_v23 }
 0xb54   :  { %4466 = vrcp.f32 %v1950_v25 }
 0xb5d   :  { %v4465_v1 = vpop.eup %4464 }
 0xb5e   :  { %v4467_v0 = vpop.eup %4466  ;;  %v1959_v29 = vmul.f32 %v4465_v1, %v1957_v27 }
 0xb5f   :  { %v1958_v30 = vmul.f32 %v4467_v0, %v1957_v27 }
 0xb60   :  { %v1961_v32 = vmul.f32 %v1959_v29, %v1925_v21 }
 0xb61   :  { %v1960_v34 = vmul.f32 %v1958_v30, %v1924_v22 }
 0xb62   :  { %v1967_v38 = vadd.f32 %v1965_v31, %v1961_v32 }
 0xb63   :  { %v1966_v37 = vadd.f32 %v1965_v31, %v1960_v34 }
 0xb65   :  { %4169 = vmatprep.mubr.msk.f32.mxu1 %vm43_vm0, %v1966_v37 }
 0xb66   :  { %4170 = vmatmul.mubr.msk.f32.vlgmr.msra.gmra.mrb[22].mxu1 %vm43_vm0, %v1967_v38 }
 0xb67   :  { %4174 = vmatprep.mubr.msk.f32.mxu1 %vm4541_vm5, %v4540_v52 }
 0xc39   :  { %v4171_v44 = vpop.f32.mrb[22].mxu1 }
 0xc3a   :  { %v2044_v45 = vpop.f32.mrb[23].mxu1  ;;  %v5013_v53 = vadd.f32 %v4171_v44, %v1971_v43 }
 0xc3b   :  { %v4999_v57 = vadd.f32 %v2044_v45, %v1971_v43 }
 0xc3d   :  { %2222 = vrot.lane.b32.xlu1 %v4999_v57, %s4542_s6  ;;  %2054 = vrot.lane.b32.xlu0 %v4999_v57, %s4543_s7 }
 0xc41   :  { %2220 = vrot.lane.b32.xlu1 %v4999_v57, %s4544_s8  ;;  %2392 = vrot.lane.b32.xlu0 %v4999_v57, %s4545_s9 }
 0xc45   :  { %2394 = vrot.lane.b32.xlu1 %v4999_v57, %s4546_s10  ;;  %2564 = vrot.lane.b32.xlu0 %v4999_v57, %s4547_s11 }
 0xc49   :  { %2566 = vrot.lane.b32.xlu1 %v4999_v57, %s4548_s12  ;;  %2905 = vrot.lane.b32.xlu0 %v5013_v53, %s4542_s6 }
 0xc4d   :  { %2737 = vrot.lane.b32.xlu1 %v5013_v53, %s4543_s7  ;;  %3077 = vrot.lane.b32.xlu0 %v5013_v53, %s4546_s10 }
 0xc51   :  { %2903 = vrot.lane.b32.xlu1 %v5013_v53, %s4544_s8  ;;  %3249 = vrot.lane.b32.xlu0 %v5013_v53, %s4548_s12 }
 0xc55   :  { %3075 = vrot.lane.b32.xlu1 %v5013_v53, %s4545_s9 }
 0xc59   :  { %3247 = vrot.lane.b32.xlu1 %v5013_v53, %s4547_s11 }
 0xcaf   :  { %v2223_v49 = vpop.permute.xlu1 %2222  ;;  %v2055_v33 = vpop.permute.xlu0 %2054 }
 0xcb0   :  { %4173 = vmatpush3.xpose.msk.msra.mxu1 %vm185_vm6, %v2055_v33  ;;  %4183 = vmatpush3.xpose.msk.msra.mxu0 %vm185_vm6, %v2223_v49 }
 0xcb1   :  { %4192 = vmatprep.subr.mxu0 %v4540_v52  ;;  %4177 = vmatprep.subr.mxu1 %v4540_v52 }
 0xcb3   :  { %v2221_v40 = vpop.permute.xlu1 %2220  ;;  %4175 = vmatmul.mubr.msk.f32.vlgmr.msra.gmra.mrb[24].mxu1 %vm185_vm6, %v4999_v57  ;;  %v2393_v14 = vpop.permute.xlu0 %2392 }
 0xcb4   :  { %4185 = vmatmul.mubr.msk.f32.vlgmr.msra.gmra.mrb[18].mxu0 %vm185_vm6, %v2221_v40  ;;  %4179 = vmatprep.mubr.msk.f32.mxu1 %vm4541_vm5, %v4540_v52 }
 0xcb5   :  { %4194 = vmatprep.mubr.msk.f32.mxu0 %vm4541_vm5, %v4540_v52 }
 0xcb7   :  { %v2395_v15 = vpop.permute.xlu1 %2394  ;;  %v2565_v21 = vpop.permute.xlu0 %2564 }
 0xcb8   :  { %4193 = vmatpush3.xpose.msk.msra.mxu0 %vm185_vm6, %v2395_v15 }
 0xcb9   :  { %4202 = vmatprep.subr.mxu0 %v4540_v52 }
 0xcbb   :  { %v2567_v22 = vpop.permute.xlu1 %2566  ;;  %4195 = vmatmul.mubr.msk.f32.vlgmr.msra.gmra.mrb[20].mxu0 %vm185_vm6, %v2393_v14  ;;  %v2906_v17 = vpop.permute.xlu0 %2905 }
 0xcbc   :  { %4203 = vmatpush3.xpose.msk.msra.mxu0 %vm185_vm6, %v2567_v22  ;;  %4204 = vmatprep.mubr.msk.f32.mxu0 %vm4541_vm5, %v4540_v52 }
 0xcbd   :  { %4212 = vmatprep.subr.mxu0 %v4540_v52 }
 0xcbf   :  { %v2738_v50 = vpop.permute.xlu1 %2737  ;;  %4205 = vmatmul.mubr.msk.f32.vlgmr.msra.gmra.mrb[22].mxu0 %vm185_vm6, %v2565_v21  ;;  %v3078_v48 = vpop.permute.xlu0 %3077 }
 0xcc0   :  { %4213 = vmatpush3.xpose.msk.msra.mxu0 %vm185_vm6, %v2738_v50  ;;  %4214 = vmatprep.mubr.msk.f32.mxu0 %vm4541_vm5, %v4540_v52 }
 0xcc1   :  { %4222 = vmatprep.subr.mxu0 %v4540_v52 }
 0xcc3   :  { %v2904_v51 = vpop.permute.xlu1 %2903  ;;  %4215 = vmatmul.mubr.msk.f32.vlgmr.msra.gmra.mrb[24].mxu0 %vm185_vm6, %v5013_v53  ;;  %v3250_v63 = vpop.permute.xlu0 %3249 }
 0xcc4   :  { %4223 = vmatpush3.xpose.msk.msra.mxu0 %vm185_vm6, %v2906_v17  ;;  %4224 = vmatprep.mubr.msk.f32.mxu0 %vm4541_vm5, %v4540_v52 }
 0xcc5   :  { %4232 = vmatprep.subr.mxu0 %v4540_v52 }
 0xcc7   :  { %4225 = vmatmul.mubr.msk.f32.vlgmr.msra.gmra.mrb[26].mxu0 %vm185_vm6, %v2904_v51  ;;  %v3076_v60 = vpop.permute.xlu1 %3075 }
 0xcc8   :  { %4233 = vmatpush3.xpose.msk.msra.mxu0 %vm185_vm6, %v3078_v48  ;;  %4234 = vmatprep.mubr.msk.f32.mxu0 %vm4541_vm5, %v4540_v52 }
 0xcc9   :  { %4242 = vmatprep.subr.mxu0 %v4540_v52 }
 0xccb   :  { %4235 = vmatmul.mubr.msk.f32.vlgmr.msra.gmra.mrb[28].mxu0 %vm185_vm6, %v3076_v60  ;;  %v3248_v2 = vpop.permute.xlu1 %3247 }
 0xccc   :  { %4243 = vmatpush3.xpose.msk.msra.mxu0 %vm185_vm6, %v3250_v63  ;;  %4244 = vmatprep.mubr.msk.f32.mxu0 %vm4541_vm5, %v4540_v52 }
 0xccf   :  { %4245 = vmatmul.mubr.msk.f32.vlgmr.msra.gmra.mrb[30].mxu0 %vm185_vm6, %v3248_v2 }
 0xd86   :  { %v2126_v3 = vpop.f32.mrb[24].mxu1 }
 0xd87   :  { %v2130_v16 = vmul.f32 0.35355338, %v2126_v3  ;;  %v4176_v19 = vpop.f32.mrb[25].mxu1  ;;  %v2294_v4 = vpop.f32.mrb[18].mxu0 }
 0xd88   :  { %v2298_v6 = vmul.f32 0.35355338, %v2294_v4  ;;  %v4186_v8 = vpop.f32.mrb[19].mxu0 }
 0xd89   :  { %v2131_v9 = vadd.f32 %v2130_v16, %v4737_v18 }
 0xd8a   :  { %v2299_v10 = vadd.f32 %v2298_v6, %v4737_v18 }
 0xd8b   :  { %v2132_v11 = vsel %vm185_vm6, %v2131_v9, -inf }
 0xd8c   :  { %2133 = vmax.xlane.f32.xlu0 %v2132_v11  ;;  %v2300_v12 = vsel %vm185_vm6, %v2299_v10, -inf }
 0xd8d   :  { %2301 = vmax.xlane.f32.xlu1 %v2300_v12 }
 0xd8e   :  { %v2466_v13 = vpop.f32.mrb[20].mxu0 }
 0xd8f   :  { %v2470_v20 = vmul.f32 0.35355338, %v2466_v13  ;;  %v4196_v23 = vpop.f32.mrb[21].mxu0 }
 0xd91   :  { %v5075_v24 = vadd.f32 %v2470_v20, %v4737_v18 }
 0xd92   :  { %v2638_v25 = vpop.f32.mrb[22].mxu0 }
 0xd93   :  { %v2642_v27 = vmul.f32 0.35355338, %v2638_v25  ;;  %v4206_v1 = vpop.f32.mrb[23].mxu0  ;;  %v2472_v0 = vsel %vm185_vm6, %v5075_v24, -inf }
 0xd94   :  { %2473 = vmax.xlane.f32.xlu0 %v2472_v0 }
 0xd95   :  { %v2643_v29 = vadd.f32 %v2642_v27, %v4737_v18 }
 0xd96   :  { %v2809_v30 = vpop.f32.mrb[24].mxu0 }
 0xd97   :  { %v2813_v31 = vmul.f32 0.35355338, %v2809_v30  ;;  %v4216_v32 = vpop.f32.mrb[25].mxu0  ;;  %v2644_v34 = vsel %vm185_vm6, %v2643_v29, -inf }
 0xd98   :  { %2645 = vmax.xlane.f32.xlu0 %v2644_v34 }
 0xd99   :  { %v2814_v37 = vadd.f32 %v2813_v31, %v4749_v41 }
 0xd9a   :  { %v2977_v38 = vpop.f32.mrb[26].mxu0 }
 0xd9b   :  { %v2981_v43 = vmul.f32 0.35355338, %v2977_v38  ;;  %v4226_v44 = vpop.f32.mrb[27].mxu0  ;;  %v2815_v45 = vsel %vm185_vm6, %v2814_v37, -inf }
 0xd9c   :  { %2816 = vmax.xlane.f32.xlu0 %v2815_v45 }
 0xd9d   :  { %v2982_v49 = vadd.f32 %v2981_v43, %v4749_v41 }
 0xd9e   :  { %v3149_v33 = vpop.f32.mrb[28].mxu0 }
 0xd9f   :  { %v3153_v40 = vmul.f32 0.35355338, %v3149_v33  ;;  %v4236_v14 = vpop.f32.mrb[29].mxu0  ;;  %v2983_v18 = vsel %vm185_vm6, %v2982_v49, -inf }
 0xda0   :  { %2984 = vmax.xlane.f32.xlu1 %v2983_v18 }
 0xda1   :  { %v3154_v15 = vadd.f32 %v3153_v40, %v4749_v41 }
 0xda2   :  { %v3321_v21 = vpop.f32.mrb[30].mxu0 }
 0xda3   :  { %v4246_v22 = vpop.f32.mrb[31].mxu0  ;;  %v3155_v17 = vsel %vm185_vm6, %v3154_v15, -inf  ;;  %v3325_v50 = vmul.f32 0.35355338, %v3321_v21 }
 0xda4   :  { %3156 = vmax.xlane.f32.xlu0 %v3155_v17 }
 0xda5   :  { %v3326_v51 = vadd.f32 %v3325_v50, %v4749_v41 }
 0xda7   :  { %v3327_v48 = vsel %vm185_vm6, %v3326_v51, -inf }
 0xdb1   :  { %2143 = vrot.lane.b32.xlu1 %v4999_v57, %s4549_s1 }
 0xdd5   :  { %3328 = vmax.xlane.f32.xlu1 %v3327_v48 }
 0xde6   :  { %2483 = vrot.lane.b32.xlu1 %v4999_v57, %s4550_s15 }
 0xdea   :  { %2655 = vrot.lane.b32.xlu1 %v4999_v57, %s4551_s16 }
 0xdee   :  { %2826 = vrot.lane.b32.xlu1 %v5013_v53, %s4549_s1 }
 0xe19   :  { %v2134_v60 = vpop.xlane.xlu0 %2133 }
 0xe1a   :  { %v2135_v63 = vsub.f32 %v2131_v9, %v2134_v60  ;;  %v2302_v2 = vpop.xlane.xlu1 %2301 }
 0xe1b   :  { %v2303_v3 = vsub.f32 %v2299_v10, %v2302_v2 }
 0xe1c   :  { %v2136_v16 = vmul.f32 1.442695, %v2135_v63 }
 0xe1d   :  { %v2304_v19 = vmul.f32 1.442695, %v2303_v3 }
 0xe1e   :  { %4468 = vpow2.f32 %v2136_v16 }
 0xe1f   :  { %4470 = vpow2.f32 %v2304_v19 }
 0xe21   :  { %v2474_v41 = vpop.xlane.xlu0 %2473 }
 0xe22   :  { %v2475_v27 = vsub.f32 %v5075_v24, %v2474_v41 }
 0xe24   :  { %v2476_v0 = vmul.f32 1.442695, %v2475_v27 }
 0xe25   :  { %v2646_v4 = vpop.xlane.xlu0 %2645 }
 0xe26   :  { %v2647_v6 = vsub.f32 %v2643_v29, %v2646_v4 }
 0xe28   :  { %v4469_v8 = vpop.eup %4468  ;;  %v2648_v11 = vmul.f32 1.442695, %v2647_v6 }
 0xe29   :  { %v5097_v12 = vpop.eup %4470  ;;  %v2138_v13 = vsel %vm185_vm6, %v4469_v8, 0.0  ;;  %v2817_v1 = vpop.xlane.xlu0 %2816 }
 0xe2a   :  { %4472 = vpow2.f32 %v2648_v11  ;;  %2139 = vadd.xlane.f32.xlu0 %v2138_v13  ;;  %v2306_v9 = vsel %vm185_vm6, %v5097_v12, 0.0  ;;  %v2818_v29 = vsub.f32 %v2814_v37, %v2817_v1 }
 0xe2b   :  { %2307 = vadd.xlane.f32.xlu1 %v2306_v9  ;;  %4474 = vpow2.f32 %v2476_v0 }
 0xe2c   :  { %v2819_v31 = vmul.f32 1.442695, %v2818_v29 }
 0xe2d   :  { %v2985_v10 = vpop.xlane.xlu1 %2984 }
 0xe2e   :  { %4476 = vpow2.f32 %v2819_v31  ;;  %v2986_v34 = vsub.f32 %v2982_v49, %v2985_v10 }
 0xe30   :  { %v2987_v43 = vmul.f32 1.442695, %v2986_v34 }
 0xe31   :  { %v2144_v20 = vpop.permute.xlu1 %2143  ;;  %v3157_v30 = vpop.xlane.xlu0 %3156 }
 0xe32   :  { %4178 = vmatpush3.msra.mxu1 %v2144_v20  ;;  %v3158_v32 = vsub.f32 %v3154_v15, %v3157_v30 }
 0xe33   :  { %4187 = vmatprep.subr.mxu1 %v4540_v52 }
 0xe34   :  { %v5103_v23 = vpop.eup %4472  ;;  %v3159_v38 = vmul.f32 1.442695, %v3158_v32 }
 0xe35   :  { %v2650_v25 = vsel %vm185_vm6, %v5103_v23, 0.0  ;;  %v4475_v44 = vpop.eup %4474 }
 0xe36   :  { %2651 = vadd.xlane.f32.xlu1 %v2650_v25  ;;  %4478 = vpow2.f32 %v3159_v38 }
 0xe37   :  { %4480 = vpow2.f32 %v2987_v43 }
 0xe38   :  { %v5113_v45 = vpop.eup %4476 }
 0xe39   :  { %v2821_v37 = vsel %vm185_vm6, %v5113_v45, 0.0 }
 0xe40   :  { %2311 = vrot.lane.b32.xlu0 %v4999_v57, %s4552_s17  ;;  %v2478_v57 = vsel %vm185_vm6, %v4475_v44, 0.0  ;;  %v5117_v33 = vpop.eup %4478 }
 0xe41   :  { %v3161_v49 = vsel %vm185_vm6, %v5117_v33, 0.0  ;;  %v4481_v18 = vpop.eup %4480 }
 0xe42   :  { %v2989_v15 = vsel %vm185_vm6, %v4481_v18, 0.0 }
 0xe47   :  { %2994 = vrot.lane.b32.xlu1 %v5013_v53, %s4552_s17 }
 0xe5f   :  { %2479 = vadd.xlane.f32.xlu0 %v2478_v57 }
 0xe62   :  { %v3329_v24 = vpop.xlane.xlu1 %3328 }
 0xe63   :  { %v3330_v40 = vsub.f32 %v3326_v51, %v3329_v24  ;;  %2822 = vadd.xlane.f32.xlu0 %v2821_v37 }
 0xe65   :  { %v3331_v14 = vmul.f32 1.442695, %v3330_v40 }
 0xe66   :  { %v2484_v17 = vpop.permute.xlu1 %2483 }
 0xe67   :  { %4482 = vpow2.f32 %v3331_v14  ;;  %3162 = vadd.xlane.f32.xlu0 %v3161_v49 }
 0xe6a   :  { %v2656_v50 = vpop.permute.xlu1 %2655 }
 0xe6b   :  { %2990 = vadd.xlane.f32.xlu1 %v2989_v15 }
 0xe6e   :  { %v2827_v51 = vpop.permute.xlu1 %2826 }
 0xe71   :  { %v5122_v21 = vpop.eup %4482 }
 0xe72   :  { %v3333_v22 = vsel %vm185_vm6, %v5122_v21, 0.0 }
 0xe73   :  { %3334 = vadd.xlane.f32.xlu0 %v3333_v22 }
 0xe7c   :  { %3338 = vrot.lane.b32.xlu1 %v5013_v53, %s4551_s16 }
 0xe80   :  { %4403 = vrot.lane.b32.xlu1 %v4402_v59, %s4553_s18 }
 0xe89   :  { %3166 = vrot.lane.b32.xlu0 %v5013_v53, %s4550_s15 }
 0xeb7   :  { %v2140_v48 = vpop.xlane.xlu0 %2139 }
 0xeb8   :  { %4484 = vrcp.f32 %v2140_v48  ;;  %v2308_v60 = vpop.xlane.xlu1 %2307 }
 0xeb9   :  { %4486 = vrcp.f32 %v2308_v60 }
 0xebb   :  { %v2312_v16 = vpop.permute.xlu0 %2311 }
 0xec2   :  { %v4485_v63 = vpop.eup %4484 }
 0xec3   :  { %v2142_v2 = vmul.f32 %v4485_v63, %v4469_v8  ;;  %v4487_v3 = vpop.eup %4486  ;;  %v2652_v55 = vpop.xlane.xlu1 %2651 }
 0xec4   :  { %v2310_v54 = vmul.f32 %v4487_v3, %v5097_v12 }
 0xec5   :  { %4180 = vmatmul.mubr.msk.f32.vlgmr.msra.gmra.mrb[26].mxu1 %vm185_vm6, %v2142_v2 }
 0xec6   :  { %4188 = vmatpush3.msra.mxu1 %v2312_v16  ;;  %4189 = vmatprep.mubr.msk.f32.mxu1 %vm4541_vm5, %v4540_v52 }
 0xec7   :  { %4197 = vmatprep.subr.mxu1 %v4540_v52  ;;  %v2995_v19 = vpop.permute.xlu1 %2994 }
 0xec9   :  { %4190 = vmatmul.mubr.msk.f32.vlgmr.msra.gmra.mrb[28].mxu1 %vm185_vm6, %v2310_v54 }
 0xeca   :  { %4198 = vmatpush3.msra.mxu1 %v2484_v17  ;;  %4199 = vmatprep.mubr.msk.f32.mxu1 %vm4541_vm5, %v4540_v52 }
 0xecb   :  { %4207 = vmatprep.subr.mxu1 %v4540_v52 }
 0xeec   :  { %v2480_v59 = vpop.xlane.xlu0 %2479 }
 0xeed   :  { %4488 = vrcp.f32 %v2480_v59 }
 0xeee   :  { %4490 = vrcp.f32 %v2652_v55  ;;  %v3523_v55 = vrot.slane %v4986_v26, %v1663_v58 }
 0xef0   :  { %v2823_v53 = vpop.xlane.xlu0 %2822 }
 0xef1   :  { %4492 = vrcp.f32 %v2823_v53 }
 0xef4   :  { %v3163_v6 = vpop.xlane.xlu0 %3162 }
 0xef7   :  { %v4489_v41 = vpop.eup %4488 }
 0xef8   :  { %v2482_v4 = vmul.f32 %v4489_v41, %v4475_v44  ;;  %v2991_v8 = vpop.xlane.xlu1 %2990  ;;  %v4491_v11 = vpop.eup %4490 }
 0xef9   :  { %4494 = vrcp.f32 %v2991_v8  ;;  %v2654_v12 = vmul.f32 %v4491_v11, %v5103_v23 }
 0xefa   :  { %4200 = vmatmul.mubr.msk.f32.vlgmr.msra.gmra.mrb[30].mxu1 %vm185_vm6, %v2482_v4  ;;  %4496 = vrcp.f32 %v3163_v6 }
 0xefb   :  { %4208 = vmatpush3.msra.mxu1 %v2656_v50  ;;  %4209 = vmatprep.mubr.msk.f32.mxu1 %vm4541_vm5, %v4540_v52  ;;  %v4493_v13 = vpop.eup %4492 }
 0xefc   :  { %4217 = vmatprep.subr.mxu1 %v4540_v52  ;;  %v2825_v9 = vmul.f32 %v4493_v13, %v5113_v45  ;;  %v3339_v0 = vpop.permute.xlu1 %3338 }
 0xefe   :  { %4210 = vmatmul.mubr.msk.f32.vlgmr.msra.gmra.mrb[32].mxu1 %vm185_vm6, %v2654_v12 }
 0xeff   :  { %4218 = vmatpush3.msra.mxu1 %v2827_v51  ;;  %4219 = vmatprep.mubr.msk.f32.mxu1 %vm4541_vm5, %v4540_v52 }
 0xf00   :  { %v3335_v10 = vpop.xlane.xlu0 %3334  ;;  %4227 = vmatprep.subr.mxu1 %v4540_v52  ;;  %v4404_v31 = vpop.permute.xlu1 %4403 }
 0xf01   :  { %4498 = vrcp.f32 %v3335_v10  ;;  %v4406_v32 = vunpack.i.h.bf16 %v4404_v31  ;;  %v4405_v34 = vunpack.i.l.bf16 %v4404_v31 }
 0xf02   :  { %4220 = vmatmul.mubr.msk.f32.vlgmr.msra.gmra.mrb[34].mxu1 %vm185_vm6, %v2825_v9 }
 0xf03   :  { %v4495_v20 = vpop.eup %4494  ;;  %4228 = vmatpush3.msra.mxu1 %v2995_v19  ;;  %4229 = vmatprep.mubr.msk.f32.mxu1 %vm4541_vm5, %v4540_v52  ;;  %v4341_v38 = vpack.c.bf16 %v4406_v32, %v4405_v34  ;;  %v3868_v32 = vld [vmem:[%s5290_s3 + $0x40] sm:$0xff]  ;;  %v3869_v34 = vld [vmem:[%s5290_s3 + $0x48] sm:$0xff] }
 0xf04   :  { %v2993_v23 = vmul.f32 %v4495_v20, %v4481_v18  ;;  %v3167_v25 = vpop.permute.xlu0 %3166  ;;  %4237 = vmatprep.subr.mxu1 %v4540_v52  ;;  %v4497_v27 = vpop.eup %4496 }
 0xf05   :  { %v3165_v1 = vmul.f32 %v4497_v27, %v5117_v33  ;;  %4342 = vmatprep.subr.bf16.mxu0 %v4341_v38  ;;  %v3864_v27 = vld [vmem:[%s5289_s2 + $0x48] sm:$0xff] }
 0xf06   :  { %4230 = vmatmul.mubr.msk.f32.vlgmr.msra.gmra.mrb[36].mxu1 %vm185_vm6, %v2993_v23  ;;  %4344 = vmatpush3.bf16.msra.mxu0 %v4341_v38  ;;  %v3870_v38 = vld [vmem:[%s5290_s3 + $0x50] sm:$0xff] }
 0xf07   :  { %4238 = vmatpush3.msra.mxu1 %v3167_v25  ;;  %4239 = vmatprep.mubr.msk.f32.mxu1 %vm4541_vm5, %v4540_v52 }
 0xf08   :  { %4247 = vmatprep.subr.mxu1 %v4540_v52 }
 0xf0a   :  { %4240 = vmatmul.mubr.msk.f32.vlgmr.msra.gmra.mrb[38].mxu1 %vm185_vm6, %v3165_v1  ;;  %v3865_v1 = vld [vmem:[%s5289_s2 + $0x58] sm:$0xff] }
 0xf0b   :  { %v4499_v29 = vpop.eup %4498  ;;  %4248 = vmatpush3.msra.mxu1 %v3339_v0  ;;  %4249 = vmatprep.mubr.msk.f32.mxu1 %vm4541_vm5, %v4540_v52  ;;  %v3866_v0 = vld [vmem:[%s5289_s2 + $0x68] sm:$0xff] }
 0xf0c   :  { %v3337_v30 = vmul.f32 %v4499_v29, %v5122_v21  ;;  %v4349_v29 = vpack.c.bf16 %v3865_v1, %v3864_v27 }
 0xf0e   :  { %4250 = vmatmul.mubr.msk.f32.vlgmr.msra.gmra.mrb[40].mxu1 %vm185_vm6, %v3337_v30  ;;  %v3867_v30 = vld [vmem:[%s5289_s2 + $0x78] sm:$0xff]  ;;  %4350 = vmatprep.subr.bf16.mxu1 %v4349_v29 }
 0xf0f   :  { %v4353_v31 = vpack.c.bf16 %v3867_v30, %v3866_v0  ;;  %4352 = vmatpush3.bf16.msra.mxu1 %v4349_v29 }
 0xf11   :  { %4354 = vmatprep.subr.bf16.mxu1 %v4353_v31 }
 0xf13   :  { %4356 = vmatpush3.bf16.msra.mxu1 %v4353_v31 }
 0xf98   :  { %v2215_v43 = vpop.f32.mrb[26].mxu1 }
 0xf99   :  { %2219 = vst.msk [vmem:[#allocation2] sm:$0xff] %vm185_vm6, %v2215_v43  ;;  %v4181_v44 = vpop.f32.mrb[27].mxu1  ;;  %v4357_v43 = vpack.c.bf16 %v3869_v34, %v3868_v32 }
 0xf9a   :  { %v3871_v44 = vld [vmem:[%s5290_s3 + $0x58] sm:$0xff] }
 0xf9c   :  { %v2383_v57 = vpop.f32.mrb[28].mxu1 }
 0xf9d   :  { %2388 = vrot.lane.b32.xlu0 %v2383_v57, %s4554_s19  ;;  %v4191_v45 = vpop.f32.mrb[29].mxu1  ;;  %v4361_v57 = vpack.c.bf16 %v3871_v44, %v3870_v38 }
 0xf9e   :  { %v3872_v45 = vld [vmem:[%s5290_s3 + $0x60] sm:$0xff] }
 0xfcd   :  { %v2555_v24 = vpop.f32.mrb[30].mxu1 }
 0xfce   :  { %2560 = vrot.lane.b32.xlu1 %v2555_v24, %s4555_s20  ;;  %v4201_v52 = vpop.f32.mrb[31].mxu1  ;;  %v3873_v24 = vld [vmem:[%s5290_s3 + $0x68] sm:$0xff] }
 0xfcf   :  { %v4365_v52 = vpack.c.bf16 %v3873_v24, %v3872_v45 }
 0xfd1   :  { %v2727_v37 = vpop.f32.mrb[32].mxu1 }
 0xfd2   :  { %2732 = vrot.lane.b32.xlu0 %v2727_v37, %s4556_s21  ;;  %v4211_v33 = vpop.f32.mrb[33].mxu1 }
 0xfd5   :  { %v2898_v40 = vpop.f32.mrb[34].mxu1 }
 0xfd6   :  { %2902 = vst.msk [vmem:[#allocation2 + $0x8] sm:$0xff] %vm185_vm6, %v2898_v40  ;;  %v4221_v14 = vpop.f32.mrb[35].mxu1 }
 0xfd9   :  { %v3066_v49 = vpop.f32.mrb[36].mxu1 }
 0xfda   :  { %3071 = vrot.lane.b32.xlu0 %v3066_v49, %s4554_s19  ;;  %v4231_v18 = vpop.f32.mrb[37].mxu1 }
 0xfdd   :  { %v3238_v15 = vpop.f32.mrb[38].mxu1 }
 0xfde   :  { %3243 = vrot.lane.b32.xlu1 %v3238_v15, %s4555_s20  ;;  %v4241_v21 = vpop.f32.mrb[39].mxu1 }
 0xfe1   :  { %v3410_v22 = vpop.f32.mrb[40].mxu1 }
 0xfe2   :  { %4408 = vrot.lane.b32.xlu1 %v4407_v62, %s4553_s18  ;;  %3415 = vrot.lane.b32.xlu0 %v3410_v22, %s4556_s21  ;;  %v4251_v17 = vpop.f32.mrb[41].mxu1 }
0x100f   :  { %v2389_v50 = vpop.permute.xlu0 %2388 }
0x1010   :  { %2391 = vst.msk [vmem:[#allocation2] sm:$0xff] %vm525_vm7, %v2389_v50 }
0x1040   :  { %v2561_v51 = vpop.permute.xlu1 %2560 }
0x1041   :  { %2563 = vst.msk [vmem:[#allocation2] sm:$0xff] %vm698_vm8, %v2561_v51 }
0x1044   :  { %v2733_v48 = vpop.permute.xlu0 %2732 }
0x1045   :  { %2735 = vst.msk [vmem:[#allocation2] sm:$0xff] %vm871_vm9, %v2733_v48 }
0x104c   :  { %v3072_v60 = vpop.permute.xlu0 %3071  ;;  %v3419_v63 = vld [vmem:[#allocation2] sm:$0xff] }
0x104d   :  { %3074 = vst.msk [vmem:[#allocation2 + $0x8] sm:$0xff] %vm525_vm7, %v3072_v60  ;;  %4260 = vmatprep.mubr.msk.f32.mxu0 %vm43_vm0, %v3419_v63 }
0x1050   :  { %v3244_v56 = vpop.permute.xlu1 %3243 }
0x1051   :  { %3246 = vst.msk [vmem:[#allocation2 + $0x8] sm:$0xff] %vm698_vm8, %v3244_v56 }
0x1054   :  { %v4409_v61 = vpop.permute.xlu1 %4408  ;;  %v3416_v62 = vpop.permute.xlu0 %3415 }
0x1055   :  { %v4411_v2 = vunpack.i.h.bf16 %v4409_v61  ;;  %v4410_v3 = vunpack.i.l.bf16 %v4409_v61  ;;  %3418 = vst.msk [vmem:[#allocation2 + $0x8] sm:$0xff] %vm871_vm9, %v3416_v62  ;;  %v3567_v61 = vrot.slane %v4986_v26, %v1707_v5  ;;  %v3874_v5 = vld [vmem:[%s5290_s3 + $0x70] sm:$0xff] }
0x1057   :  { %v4345_v16 = vpack.c.bf16 %v4411_v2, %v4410_v3  ;;  %v3575_v3 = vrot.slane %v4986_v26, %v1715_v7 }
0x1059   :  { %4346 = vmatprep.subr.bf16.mxu0 %v4345_v16 }
0x105a   :  { %4348 = vmatpush3.bf16.msra.mxu0 %v4345_v16 }
0x105b   :  { %4358 = vmatprep.subr.bf16.mxu0 %v4357_v43 }
0x105c   :  { %v3420_v54 = vld [vmem:[#allocation2 + $0x8] sm:$0xff] }
0x105d   :  { %4261 = vmatmul.mubr.msk.f32.vlgmr.msra.gmra.mrb[32].mxu0 %vm43_vm0, %v3420_v54 }
0x105e   :  { %4360 = vmatpush3.bf16.msra.mxu0 %v4357_v43 }
0x105f   :  { %4362 = vmatprep.subr.bf16.mxu0 %v4361_v57 }
0x1062   :  { %4364 = vmatpush3.bf16.msra.mxu0 %v4361_v57 }
0x1063   :  { %4366 = vmatprep.subr.bf16.mxu0 %v4365_v52 }
0x1066   :  { %4368 = vmatpush3.bf16.msra.mxu0 %v4365_v52 }
0x1130   :  { %v4262_v59 = vpop.f32.mrb[32].mxu0 }
0x1131   :  { %v3519_v53 = vadd.f32 %v4262_v59, %v4942_v46  ;;  %v3509_v19 = vpop.f32.mrb[33].mxu0 }
0x1132   :  { %v3518_v41 = vadd.f32 %v3509_v19, %v4944_v47 }
0x1133   :  { %v5192_v4 = vadd.f32 %v3523_v55, %v3519_v53 }
0x1134   :  { %v5194_v6 = vadd.f32 %v3523_v55, %v3518_v41  ;;  %v3875_v41 = vld [vmem:[%s5290_s3 + $0x78] sm:$0xff] }
0x1135   :  { %v3529_v8 = vsel %vm43_vm0, %v5192_v4, 0.0  ;;  %v4369_v7 = vpack.c.bf16 %v3875_v41, %v3874_v5 }
0x1136   :  { %3530 = vadd.xlane.f32.xlu1 %v3529_v8  ;;  %v3526_v11 = vsel %vm43_vm0, %v5194_v6, 0.0  ;;  %v3581_v8 = vrot.slane %v4986_v26, %v1721_v28 }
0x1137   :  { %3527 = vadd.xlane.f32.xlu0 %v3526_v11  ;;  %4370 = vmatprep.subr.bf16.mxu0 %v4369_v7 }
0x1138   :  { %4372 = vmatpush3.bf16.msra.mxu0 %v4369_v7 }
0x11c3   :  { %v3531_v12 = vpop.xlane.xlu1 %3530 }
0x11c4   :  { %v3533_v58 = vmul.f32 0.03125, %v3531_v12  ;;  %v3528_v13 = vpop.xlane.xlu0 %3527 }
0x11c5   :  { %v3532_v9 = vmul.f32 0.03125, %v3528_v13 }
0x11c6   :  { %v5201_v46 = vsub.f32 %v5192_v4, %v3533_v58 }
0x11c7   :  { %v3534_v47 = vsub.f32 %v5194_v6, %v3532_v9 }
0x11c8   :  { %v3537_v23 = vmul.f32 %v5201_v46, %v5201_v46 }
0x11c9   :  { %v3536_v10 = vmul.f32 %v3534_v47, %v3534_v47 }
0x11ca   :  { %v3541_v25 = vsel %vm43_vm0, %v3537_v23, 0.0 }
0x11cb   :  { %v3538_v20 = vsel %vm43_vm0, %v3536_v10, 0.0 }
0x11cc   :  { %3539 = vadd.xlane.f32.xlu0 %v3538_v20 }
0x11d0   :  { %3542 = vadd.xlane.f32.xlu0 %v3541_v25 }
0x1259   :  { %v3540_v37 = vpop.xlane.xlu0 %3539 }
0x125a   :  { %v3544_v33 = vmul.f32 0.032258064, %v3540_v37 }
0x125c   :  { %4500 = vrsqrt.f32 %v3544_v33  ;;  %vm3548_vm4 = vcmp.eq.f32.partialorder %v3544_v33, inf  ;;  %v3551_v15 = vand.u32 2147483648, %v3544_v33  ;;  %vm3550_vm5 = vcmp.eq.f32.partialorder %v3544_v33, 0.0 }
0x125d   :  { %v3543_v40 = vpop.xlane.xlu0 %3542 }
0x125e   :  { %v3545_v14 = vmul.f32 0.032258064, %v3543_v40 }
0x1260   :  { %4502 = vrsqrt.f32 %v3545_v14  ;;  %vm3555_vm6 = vcmp.eq.f32.partialorder %v3545_v14, inf  ;;  %v3558_v48 = vand.u32 2147483648, %v3545_v14  ;;  %vm3557_vm7 = vcmp.eq.f32.partialorder %v3545_v14, 0.0 }
0x1266   :  { %v4501_v49 = vpop.eup %4500 }
0x1267   :  { %v3547_v18 = vmul.f32 %v4501_v49, %v3544_v33 }
0x1269   :  { %v3549_v21 = vsel %vm3548_vm4, %v3544_v33, %v3547_v18 }
0x126a   :  { %v4503_v22 = vpop.eup %4502  ;;  %v3552_v17 = vsel %vm3550_vm5, %v3551_v15, %v3549_v21 }
0x126b   :  { %v3560_v50 = vadd.f32 1e-06, %v3552_v17  ;;  %v3554_v51 = vmul.f32 %v4503_v22, %v3545_v14  ;;  %v3908_v17 = vld [vmem:[%s5291_s4 + $0x10] sm:$0xff]  ;;  %s4516_s4 = scalar_lea.vmem %s3816_s30, 256 }
0x126c   :  { %p4517_p0 = scmp.ne.s32.totalorder %s3816_s30, %s4516_s4  ;;  %p4522_p2 = scmp.lt.s32.totalorder %s4516_s4, %s4516_s4 }
0x126d   :  { %4504 = vrcp.f32 %v3560_v50  ;;  %v3556_v60 = vsel %vm3555_vm6, %v3545_v14, %v3554_v51  ;;  %v3797_v50 = vrot.slane %v3908_v17, %v4636_v39 }
0x126e   :  { %v3559_v63 = vsel %vm3557_vm7, %v3558_v48, %v3556_v60  ;;  %p4523_p3 = por %p4522_p2, %p4521_p1 }
0x126f   :  { %v3561_v56 = vadd.f32 1e-06, %v3559_v63  ;;  %v3805_v63 = vrot.slane %v3908_v17, %v4646_v42 }
0x1270   :  { %p4524_p4 = pnand %p4523_p3, %p4517_p0 }
0x1271   :  { %4506 = vrcp.f32 %v3561_v56 }
0x1277   :  { %v4505_v62 = vpop.eup %4504 }
0x1278   :  { %v3568_v2 = vmul.f32 %v4505_v62, %v3567_v61 }
0x127a   :  { %v3570_v16 = vmul.f32 %v3568_v2, %v3534_v47  ;;  %v3751_v47 = vrot.slane %v4986_v26, %v1892_v36 }
0x127b   :  { %v4507_v54 = vpop.eup %4506 }
0x127c   :  { %v3569_v55 = vmul.f32 %v4507_v54, %v3567_v61  ;;  %v3576_v59 = vadd.f32 %v3575_v3, %v3570_v16 }
0x127e   :  { %v3571_v53 = vmul.f32 %v3569_v55, %v5201_v46  ;;  %4271 = vmatprep.mubr.msk.f32.mxu1 %vm43_vm0, %v3576_v59 }
0x1280   :  { %v3577_v19 = vadd.f32 %v3575_v3, %v3571_v53 }
0x1282   :  { %4272 = vmatmul.mubr.msk.f32.vlgmr.msra.gmra.mrb[42].mxu1 %vm43_vm0, %v3577_v19 }
0x1355   :  { %v4273_v11 = vpop.f32.mrb[42].mxu1 }
0x1356   :  { %v3660_v12 = vadd.f32 %v4273_v11, %v3581_v8  ;;  %v3654_v58 = vpop.f32.mrb[43].mxu1 }
0x1357   :  { %v3655_v13 = vadd.f32 %v3654_v58, %v3581_v8 }
0x1358   :  { %v3664_v46 = vmax.f32 %v3660_v12, 0.0 }
0x1359   :  { %v3663_v9 = vmax.f32 %v3655_v13, 0.0 }
0x135b   :  { %4290 = vmatprep.mubr.msk.f32.mxu0 %vm1806_vm14, %v3663_v9 }
0x135c   :  { %4291 = vmatmul.mubr.msk.f32.vlgmr.msra.gmra.mrb[34].mxu0 %vm1806_vm14, %v3664_v46 }
0x142f   :  { %v4292_v10 = vpop.f32.mrb[34].mxu0 }
0x1430   :  { %v3747_v20 = vadd.f32 %v4292_v10, %v5192_v4  ;;  %v3737_v23 = vpop.f32.mrb[35].mxu0 }
0x1431   :  { %v3746_v28 = vadd.f32 %v3737_v23, %v5194_v6 }
0x1432   :  { %v3753_v25 = vadd.f32 %v3751_v47, %v3747_v20 }
0x1433   :  { %v3752_v27 = vadd.f32 %v3751_v47, %v3746_v28 }
0x1434   :  { %v3759_v1 = vsel %vm43_vm0, %v3753_v25, 0.0 }
0x1435   :  { %3760 = vadd.xlane.f32.xlu1 %v3759_v1  ;;  %v3756_v0 = vsel %vm43_vm0, %v3752_v27, 0.0 }
0x1436   :  { %3757 = vadd.xlane.f32.xlu0 %v3756_v0 }
0x14c2   :  { %v3761_v29 = vpop.xlane.xlu1 %3760 }
0x14c3   :  { %v3763_v30 = vmul.f32 0.03125, %v3761_v29  ;;  %v3758_v31 = vpop.xlane.xlu0 %3757 }
0x14c4   :  { %v3762_v35 = vmul.f32 0.03125, %v3758_v31 }
0x14c5   :  { %v3765_v32 = vsub.f32 %v3753_v25, %v3763_v30 }
0x14c6   :  { %v3764_v36 = vsub.f32 %v3752_v27, %v3762_v35 }
0x14c7   :  { %v3767_v26 = vmul.f32 %v3765_v32, %v3765_v32 }
0x14c8   :  { %v3766_v34 = vmul.f32 %v3764_v36, %v3764_v36 }
0x14c9   :  { %v3771_v4 = vsel %vm43_vm0, %v3767_v26, 0.0 }
0x14ca   :  { %3772 = vadd.xlane.f32.xlu1 %v3771_v4  ;;  %v3768_v6 = vsel %vm43_vm0, %v3766_v34, 0.0 }
0x14cb   :  { %3769 = vadd.xlane.f32.xlu0 %v3768_v6 }
0x1557   :  { %v3773_v38 = vpop.xlane.xlu1 %3772 }
0x1558   :  { %v3775_v43 = vmul.f32 0.032258064, %v3773_v38  ;;  %v3770_v44 = vpop.xlane.xlu0 %3769 }
0x1559   :  { %v3774_v57 = vmul.f32 0.032258064, %v3770_v44 }
0x155a   :  { %4508 = vrsqrt.f32 %v3775_v43  ;;  %vm3785_vm8 = vcmp.eq.f32.partialorder %v3775_v43, inf  ;;  %v3788_v37 = vand.u32 2147483648, %v3775_v43  ;;  %vm3787_vm9 = vcmp.eq.f32.partialorder %v3775_v43, 0.0 }
0x155b   :  { %4510 = vrsqrt.f32 %v3774_v57  ;;  %vm3778_vm10 = vcmp.eq.f32.partialorder %v3774_v57, inf  ;;  %v3781_v14 = vand.u32 2147483648, %v3774_v57  ;;  %vm3780_vm11 = vcmp.eq.f32.partialorder %v3774_v57, 0.0 }
0x1564   :  { %v4509_v45 = vpop.eup %4508 }
0x1565   :  { %v4511_v24 = vpop.eup %4510  ;;  %v3784_v52 = vmul.f32 %v4509_v45, %v3775_v43 }
0x1566   :  { %v3777_v33 = vmul.f32 %v4511_v24, %v3774_v57 }
0x1567   :  { %v3786_v40 = vsel %vm3785_vm8, %v3775_v43, %v3784_v52 }
0x1568   :  { %v3789_v49 = vsel %vm3787_vm9, %v3788_v37, %v3786_v40  ;;  %v3779_v18 = vsel %vm3778_vm10, %v3774_v57, %v3777_v33 }
0x1569   :  { %v3791_v15 = vadd.f32 1e-06, %v3789_v49  ;;  %v3782_v21 = vsel %vm3780_vm11, %v3781_v14, %v3779_v18 }
0x156a   :  { %v3790_v22 = vadd.f32 1e-06, %v3782_v21 }
0x156b   :  { %4512 = vrcp.f32 %v3791_v15 }
0x156c   :  { %4514 = vrcp.f32 %v3790_v22 }
0x1575   :  { %v4513_v51 = vpop.eup %4512 }
0x1576   :  { %v4515_v48 = vpop.eup %4514  ;;  %v3799_v60 = vmul.f32 %v4513_v51, %v3797_v50 }
0x1577   :  { %v3798_v56 = vmul.f32 %v4515_v48, %v3797_v50 }
0x1578   :  { %v3801_v61 = vmul.f32 %v3799_v60, %v3765_v32 }
0x1579   :  { %v3800_v62 = vmul.f32 %v3798_v56, %v3764_v36 }
0x157a   :  { %v3807_v2 = vadd.f32 %v3805_v63, %v3801_v61 }
0x157b   :  { %v3806_v3 = vadd.f32 %v3805_v63, %v3800_v62 }
0x157c   :  { %3809 = vst.msk [vmem:[#allocation3 + $0x8] sm:$0xff] %vm43_vm0, %v3807_v2 }
0x157d   :  { %3808 = vst.msk [vmem:[#allocation3] sm:$0xff] %vm43_vm0, %v3806_v3 }
0x157e   :  { %4527 = shalt.err (!%p4524_p4)
}
0x157f   :  { %s4528_s8 = scalar_lea.hbm %s5292_s5, 256 }
0x1580   :  { %p4529_p5 = scmp.ne.s32.totalorder %s5292_s5, %s4528_s8  ;;  %p4532_p6 = scmp.lt.u32.totalorder %s4528_s8, %s5292_s5 }
0x1582   :  { %p4534_p7 = pnand %p4532_p6, %p4529_p5 }
0x1584   :  { %4537 = shalt.err (!%p4534_p7)
}
0x1585   :  { %s4558_s1 = smov 128  }
0x1586   :  { %3821 = dma.vmem_to_hbm [thread:$0]  %s3816_s30, 256, %s5292_s5, [#allocation4], %s4558_s1, %s4558_s1, %s4554_s19  }
0x1587   :  { %4538 = dma.done.wait [#allocation4], 256  }
0x1588   :  { %4539 = vsyncadd [#allocation4], 4294967040 }
0x1589   :  { %3825 = vsyncpa [#allocation4], 1 }

</bundles_post_ra>
